<compile_context>
chip_gen: v7x
topology: tpu7x:2x2x1
jax: 0.10.0
libtpu: 0.0.40
codegen_flags: <defaults>
</compile_context>

<pallas_src>
import jax
import jax.numpy as jnp
from jax import lax
from jax.experimental import pallas as pl
from jax.experimental.pallas import tpu as pltpu
import numpy as np

CP = 128  # lane width / padded channel count for activations


def _round_up(x, m):
    return ((x + m - 1) // m) * m


def _nbytes(shape, itemsize):
    n = itemsize
    for s in shape:
        n *= s
    return n


# ----------------------------- Pallas kernel --------------------------------

def make_basic_block_kernel(bsz, ho, wo, k1, cp):
    """Fused BasicBlock body for one grid step (bsz images).

    col_ref: (bsz*ho*wo, k1)   bf16 conv1 im2col rows (wrapper-built)
    w1d_ref: (k1, 2*cp)        bf16 [conv1 | downsample/identity] weights
    b1/b2/bds_ref: (1, cp)     f32 folded BN biases
    w2_ref:  (3, 3, cp, cp)    bf16 conv2 weights (BN2 scale folded)
    o_ref:   (bsz*ho*wo, cp)   f32 output rows
    y1p_ref: (bsz, ho+2, wo+2, cp) bf16 zero-padded conv2 input scratch
    """
    m = bsz * ho * wo

    def kernel(col_ref, w1d_ref, b1_ref, w2_ref, b2_ref, bds_ref, o_ref,
               y1p_ref):
        f32 = jnp.float32

        # conv1 (+BN1 scale) and the identity/downsample branch in ONE bf16
        # matmul with f32 accumulation; split the 2*cp-wide result.
        both = jnp.dot(col_ref[...], w1d_ref[...],
                       preferred_element_type=f32)            # (m, 2*cp)
        y1 = jnp.maximum(both[:, :cp] + b1_ref[...], 0.0)     # (m, cp) f32
        identity = both[:, cp:] + bds_ref[...]                # (m, cp) f32

        # conv2 input: zero-padded y1 in VMEM so every tap is a static slice.
        # (Re-zeroed every step: scratch is per-core under "parallel".)
        y1p_ref[...] = jnp.zeros_like(y1p_ref)
        y1p_ref[:, 1:ho + 1, 1:wo + 1, :] = (
            y1.reshape(bsz, ho, wo, cp).astype(y1p_ref.dtype))

        # conv2 (3x3, stride 1, pad 1): 9 static-slice tap matmuls, f32 acc.
        acc = jnp.zeros((m, cp), f32)
        for kh in range(3):
            for kw in range(3):
                patch = y1p_ref[:, kh:kh + ho, kw:kw + wo, :].reshape(m, cp)
                acc = acc + jnp.dot(patch, w2_ref[kh, kw],
                                    preferred_element_type=f32)

        # + BN2 bias + residual + ReLU (all f32).
        o_ref[...] = jnp.maximum(acc + b2_ref[...] + identity,
                                 0.0).astype(o_ref.dtype)

    return kernel


# ----------------------------- parameter prep -------------------------------

def fold_bn(gamma, beta, mean, var, eps=1e-5):
    """Inference-mode BN -> per-channel (scale, bias)."""
    scale = gamma / jnp.sqrt(var + eps)
    bias = beta - mean * scale
    return scale, bias


def make_block_params(p, in_planes, planes, stride, eps=1e-5, cp=CP):
    """Fold BN into weights/biases and lay out MXU-friendly bf16 matrices."""
    s1, b1 = fold_bn(p["bn1_gamma"], p["bn1_beta"], p["bn1_mean"],
                     p["bn1_var"], eps)
    s2, b2 = fold_bn(p["bn2_gamma"], p["bn2_beta"], p["bn2_mean"],
                     p["bn2_var"], eps)
    has_ds = (stride != 1) or (in_planes != planes)
    k1 = _round_up(9 * in_planes, 128)

    # conv1: OIHW -> (kh,kw,I,O) -> (9*I, O), BN1 scale folded, pad to (k1,cp)
    w1 = p["conv1_w"] * s1[:, None, None, None]
    w1 = jnp.transpose(w1, (2, 3, 1, 0)).reshape(9 * in_planes, planes)
    w1 = jnp.pad(w1, ((0, k1 - 9 * in_planes), (0, cp - planes)))

    # identity branch lives in the center-tap rows of the same matmul.
    wd = jnp.zeros((k1, cp), jnp.float32)
    if has_ds:
        sds, bds = fold_bn(p["bn_ds_gamma"], p["bn_ds_beta"], p["bn_ds_mean"],
                           p["bn_ds_var"], eps)
        wd_core = (p["conv_ds_w"] * sds[:, None, None, None])[:, :, 0, 0].T
    else:
        assert in_planes == planes and stride == 1
        wd_core = jnp.eye(in_planes, dtype=jnp.float32)
        bds = jnp.zeros((planes,), jnp.float32)
    wd = wd.at[4 * in_planes:5 * in_planes, :planes].set(wd_core)
    w1d = jnp.concatenate([w1, wd], axis=1).astype(jnp.bfloat16)  # (k1, 2*cp)

    # conv2: OIHW -> (kh,kw,I,O), BN2 scale folded, channel-pad to (3,3,cp,cp)
    w2 = p["conv2_w"] * s2[:, None, None, None]
    w2 = jnp.transpose(w2, (2, 3, 1, 0))
    w2 = jnp.pad(w2, ((0, 0), (0, 0), (0, cp - planes), (0, cp - planes)))

    def pad_bias(b):
        return jnp.pad(b, (0, cp - planes))[None, :].astype(jnp.float32)

    return {
        "w1d": w1d,
        "w2": w2.astype(jnp.bfloat16),
        "b1": pad_bias(b1),
        "b2": pad_bias(b2),
        "bds": pad_bias(bds),
        "in_planes": in_planes, "planes": planes, "stride": stride,
        "cp": cp, "k1": k1,
    }


def conv1_im2col(x_nhwc, stride, k1):
    """Wrapper-side im2col (space-to-depth) for the 3x3/stride-s/pad-1 conv1.

    Plain strided slices; no gather matmuls.  Returns bf16 (N*Ho*Wo, k1).
    """
    n, h, w, cin = x_nhwc.shape
    ho = (h - 1) // stride + 1
    wo = (w - 1) // stride + 1
    xp = jnp.pad(x_nhwc, ((0, 0), (1, 1), (1, 1), (0, 0)))
    taps = []
    for kh in range(3):
        for kw in range(3):
            taps.append(xp[:, kh::stride, kw::stride, :][:, :ho, :wo, :])
    col = jnp.concatenate(taps, axis=-1)                  # (n, ho, wo, 9*cin)
    col = jnp.pad(col, ((0, 0), (0, 0), (0, 0), (0, k1 - 9 * cin)))
    return col.reshape(n * ho * wo, k1).astype(jnp.bfloat16), ho, wo


# ------------------------------ BasicBlock ----------------------------------

def basic_block_forward(x_nchw, params, return_nchw=True):
    """BasicBlock forward.  x_nchw: (N, Cin, H, W) f32."""
    n, cin, h, w = x_nchw.shape
    assert cin == params["in_planes"]
    cp, k1 = params["cp"], params["k1"]
    stride, planes = params["stride"], params["planes"]

    x = jnp.transpose(x_nchw, (0, 2, 3, 1)).astype(jnp.float32)   # NHWC
    col, ho, wo = conv1_im2col(x, stride, k1)                      # (n*ho*wo, k1)

    # Images per grid step: target matmul M = bsz*ho*wo >= 256 rows.
    bsz = max(1, min(n, -(-256 // (ho * wo))))
    while n % bsz:
        bsz -= 1
    m = bsz * ho * wo
    grid = (n // bsz,)

    kernel = make_basic_block_kernel(bsz, ho, wo, k1, cp)

    in_specs = [
        pl.BlockSpec((m, k1), lambda i: (i, 0)),
        pl.BlockSpec((k1, 2 * cp), lambda i: (0, 0)),
        pl.BlockSpec((1, cp), lambda i: (0, 0)),
        pl.BlockSpec((3, 3, cp, cp), lambda i: (0, 0, 0, 0)),
        pl.BlockSpec((1, cp), lambda i: (0, 0)),
        pl.BlockSpec((1, cp), lambda i: (0, 0)),
    ]
    out_spec = pl.BlockSpec((m, cp), lambda i: (i, 0))
    scratch = [pltpu.VMEM((bsz, ho + 2, wo + 2, cp), jnp.bfloat16)]

    # VMEM budget from actual block sizes (double-buffered) + headroom.
    block_bytes = (_nbytes((m, k1), 2) + _nbytes((k1, 2 * cp), 2)
                   + _nbytes((3, 3, cp, cp), 2) + 3 * _nbytes((1, cp), 4)
                   + _nbytes((m, cp), 4))
    scratch_bytes = _nbytes((bsz, ho + 2, wo + 2, cp), 2)
    vmem_limit = int(min(96 * 2**20,
                         max(32 * 2**20,
                             2 * block_bytes + scratch_bytes + 8 * 2**20)))

    out = pl.pallas_call(
        kernel,
        out_shape=jax.ShapeDtypeStruct((n * ho * wo, cp), jnp.float32),
        grid=grid,
        in_specs=in_specs,
        out_specs=out_spec,
        scratch_shapes=scratch,
        compiler_params=pltpu.CompilerParams(
            dimension_semantics=("parallel",),
            vmem_limit_bytes=vmem_limit),
    )(col, params["w1d"], params["b1"], params["w2"], params["b2"],
      params["bds"])

    out = out.reshape(n, ho, wo, cp)
    if not return_nchw:
        return out                          # padded NHWC, for chaining blocks
    return jnp.transpose(out[..., :planes], (0, 3, 1, 2))          # NCHW


# ------------------------------- reference ----------------------------------

def ref_forward(x, p, stride, has_ds, eps=1e-5):
    dn = ("NCHW", "OIHW", "NCHW")

    def bn(y, g, b, mean, var):
        s = g / jnp.sqrt(var + eps)
        return (y * s[None, :, None, None]
                + (b - mean * s)[None, :, None, None])

    y = lax.conv_general_dilated(x, p["conv1_w"], (stride, stride),
                                 ((1, 1), (1, 1)), dimension_numbers=dn)
    y = jnp.maximum(bn(y, p["bn1_gamma"], p["bn1_beta"], p["bn1_mean"],
                       p["bn1_var"]), 0.0)
    y = lax.conv_general_dilated(y, p["conv2_w"], (1, 1),
                                 ((1, 1), (1, 1)), dimension_numbers=dn)
    y = bn(y, p["bn2_gamma"], p["bn2_beta"], p["bn2_mean"], p["bn2_var"])
    if has_ds:
        idn = lax.conv_general_dilated(x, p["conv_ds_w"], (stride, stride),
                                       ((0, 0), (0, 0)), dimension_numbers=dn)
        idn = bn(idn, p["bn_ds_gamma"], p["bn_ds_beta"], p["bn_ds_mean"],
                 p["bn_ds_var"])
    else:
        idn = x
    return jnp.maximum(y + idn, 0.0)


def random_block_params(key, in_planes, planes, stride):
    ks = jax.random.split(key, 15)
    p = {
        "conv1_w": 0.1 * jax.random.normal(ks[0], (planes, in_planes, 3, 3)),
        "conv2_w": 0.1 * jax.random.normal(ks[1], (planes, planes, 3, 3)),
        "bn1_gamma": 1.0 + 0.1 * jax.random.normal(ks[2], (planes,)),
        "bn1_beta": 0.1 * jax.random.normal(ks[3], (planes,)),
        "bn1_mean": 0.1 * jax.random.normal(ks[4], (planes,)),
        "bn1_var": 1.0 + 0.3 * jax.random.uniform(ks[5], (planes,)),
        "bn2_gamma": 1.0 + 0.1 * jax.random.normal(ks[6], (planes,)),
        "bn2_beta": 0.1 * jax.random.normal(ks[7], (planes,)),
        "bn2_mean": 0.1 * jax.random.normal(ks[8], (planes,)),
        "bn2_var": 1.0 + 0.3 * jax.random.uniform(ks[9], (planes,)),
    }
    has_ds = stride != 1 or in_planes != planes
    if has_ds:
        p.update({
            "conv_ds_w": 0.1 * jax.random.normal(
                ks[10], (planes, in_planes, 1, 1)),
            "bn_ds_gamma": 1.0 + 0.1 * jax.random.normal(ks[11], (planes,)),
            "bn_ds_beta": 0.1 * jax.random.normal(ks[12], (planes,)),
            "bn_ds_mean": 0.1 * jax.random.normal(ks[13], (planes,)),
            "bn_ds_var": 1.0 + 0.3 * jax.random.uniform(ks[14], (planes,)),
        })
    return {k: v.astype(jnp.float32) for k, v in p.items()}, has_ds


# --------------------------------- main --------------------------------------

if __name__ == "__main__":
    key = jax.random.PRNGKey(0)
    k_a, k_b, k_xa, k_xb = jax.random.split(key, 4)
    ok = True

    # Config A: downsampling block (stride=2, in_planes != planes).
    n, in_planes, planes, h, w, stride = 2, 4, 8, 16, 16, 2
    raw, has_ds = random_block_params(k_a, in_planes, planes, stride)
    params = make_block_params(raw, in_planes, planes, stride)
    x = jax.random.normal(k_xa, (n, in_planes, h, w), jnp.float32)
    out = jax.block_until_ready(basic_block_forward(x, params))
    ref = jax.block_until_ready(ref_forward(x, raw, stride, has_ds))
    ok &= np.allclose(np.asarray(out), np.asarray(ref), atol=3e-2, rtol=3e-2)

    # Config B: identity-passthrough block (stride=1, in_planes == planes).
    n, in_planes, planes, h, w, stride = 2, 8, 8, 16, 16, 1
    raw, has_ds = random_block_params(k_b, in_planes, planes, stride)
    params = make_block_params(raw, in_planes, planes, stride)
    x = jax.random.normal(k_xb, (n, in_planes, h, w), jnp.float32)
    out = jax.block_until_ready(basic_block_forward(x, params))
    ref = jax.block_until_ready(ref_forward(x, raw, stride, has_ds))
    ok &= np.allclose(np.asarray(out), np.asarray(ref), atol=3e-2, rtol=3e-2)

    if not ok:
        raise AssertionError("Pallas BasicBlock output mismatch vs JAX reference")
    print("KERNEL_OK")
</pallas_src>

<mosaic_0001>
module attributes {stable_mosaic.version = 11 : i64} {
  func.func @kernel(%arg0: i32, %arg1: memref<128x128xbf16, #tpu.memory_space<vmem>>, %arg2: memref<128x256xbf16, #tpu.memory_space<vmem>>, %arg3: memref<1x128xf32, #tpu.memory_space<vmem>>, %arg4: memref<3x3x128x128xbf16, #tpu.memory_space<vmem>>, %arg5: memref<1x128xf32, #tpu.memory_space<vmem>>, %arg6: memref<1x128xf32, #tpu.memory_space<vmem>>, %arg7: memref<128x128xf32, #tpu.memory_space<vmem>>, %arg8: memref<2x10x10x128xbf16, #tpu.memory_space<vmem>>) attributes {dimension_semantics = [#tpu.dimension_semantics<parallel>], iteration_bounds = array<i64: 1>, scalar_prefetch = 0 : i64, scratch_operands = 1 : i64, tpu.core_type = #tpu.core_type<tc>, window_params = [{transform_indices = @transform_0, window_bounds = array<i64: 128, 128>}, {pipeline_mode = #tpu.pipeline_mode<synchronous>, transform_indices = @transform_1, window_bounds = array<i64: 128, 256>}, {pipeline_mode = #tpu.pipeline_mode<synchronous>, transform_indices = @transform_2, window_bounds = array<i64: 1, 128>}, {pipeline_mode = #tpu.pipeline_mode<synchronous>, transform_indices = @transform_3, window_bounds = array<i64: 3, 3, 128, 128>}, {pipeline_mode = #tpu.pipeline_mode<synchronous>, transform_indices = @transform_4, window_bounds = array<i64: 1, 128>}, {pipeline_mode = #tpu.pipeline_mode<synchronous>, transform_indices = @transform_5, window_bounds = array<i64: 1, 128>}, {transform_indices = @transform_6, window_bounds = array<i64: 128, 128>}]} {
    %c0 = arith.constant 0 : index
    %c0_0 = arith.constant 0 : index
    %0 = vector.load %arg1[%c0, %c0_0] : memref<128x128xbf16, #tpu.memory_space<vmem>>, vector<128x128xbf16>
    %c0_1 = arith.constant 0 : index
    %c0_2 = arith.constant 0 : index
    %1 = vector.load %arg2[%c0_1, %c0_2] : memref<128x256xbf16, #tpu.memory_space<vmem>>, vector<128x256xbf16>
    %cst = arith.constant dense<0.000000e+00> : vector<128x256xf32>
    %2 = tpu.matmul %0, %1, %cst {dimension_numbers = #tpu.dot_dimension_numbers<[1], [0], [0], [1], [0, 0, 1, 1], [], []>} : vector<128x128xbf16>, vector<128x256xbf16>, vector<128x256xf32> -> vector<128x256xf32>
    %3 = vector.extract_strided_slice %2 {offsets = [0, 0], sizes = [128, 128], strides = [1, 1]} : vector<128x256xf32> to vector<128x128xf32>
    %c0_3 = arith.constant 0 : index
    %c0_4 = arith.constant 0 : index
    %4 = vector.load %arg3[%c0_3, %c0_4] : memref<1x128xf32, #tpu.memory_space<vmem>>, vector<1x128xf32>
    %5 = vector.broadcast %4 : vector<1x128xf32> to vector<128x128xf32>
    %6 = arith.addf %3, %5 : vector<128x128xf32>
    %cst_5 = arith.constant 0.000000e+00 : f32
    %7 = vector.broadcast %cst_5 : f32 to vector<128x128xf32>
    %8 = arith.maximumf %6, %7 : vector<128x128xf32>
    %9 = vector.extract_strided_slice %2 {offsets = [0, 128], sizes = [128, 128], strides = [1, 1]} : vector<128x256xf32> to vector<128x128xf32>
    %c0_6 = arith.constant 0 : index
    %c0_7 = arith.constant 0 : index
    %10 = vector.load %arg6[%c0_6, %c0_7] : memref<1x128xf32, #tpu.memory_space<vmem>>, vector<1x128xf32>
    %11 = vector.broadcast %10 : vector<1x128xf32> to vector<128x128xf32>
    %12 = arith.addf %9, %11 : vector<128x128xf32>
    %cst_8 = arith.constant 0.000000e+00 : bf16
    %13 = vector.broadcast %cst_8 : bf16 to vector<2x10x10x128xbf16>
    %c0_9 = arith.constant 0 : index
    %c0_10 = arith.constant 0 : index
    %c0_11 = arith.constant 0 : index
    %c0_12 = arith.constant 0 : index
    %14 = vector.load %arg8[%c0_9, %c0_10, %c0_11, %c0_12] : memref<2x10x10x128xbf16, #tpu.memory_space<vmem>>, vector<2x10x10x128xbf16>
    tpu.vector_store %arg8[%c0_9, %c0_10, %c0_11, %c0_12], %13 {strides = array<i32>} : memref<2x10x10x128xbf16, #tpu.memory_space<vmem>>, vector<2x10x10x128xbf16>,
    %15 = vector.shape_cast %8 : vector<128x128xf32> to vector<2x8x8x128xf32>
    %16 = arith.truncf %15 : vector<2x8x8x128xf32> to vector<2x8x8x128xbf16>
    %c0_13 = arith.constant 0 : index
    %c1 = arith.constant 1 : index
    %c1_14 = arith.constant 1 : index
    %c0_15 = arith.constant 0 : index
    %17 = vector.load %arg8[%c0_13, %c1, %c1_14, %c0_15] : memref<2x10x10x128xbf16, #tpu.memory_space<vmem>>, vector<2x8x8x128xbf16>
    tpu.vector_store %arg8[%c0_13, %c1, %c1_14, %c0_15], %16 {strides = array<i32>} : memref<2x10x10x128xbf16, #tpu.memory_space<vmem>>, vector<2x8x8x128xbf16>,
    %cst_16 = arith.constant 0.000000e+00 : f32
    %18 = vector.broadcast %cst_16 : f32 to vector<128x128xf32>
    %c0_17 = arith.constant 0 : index
    %c0_18 = arith.constant 0 : index
    %c0_19 = arith.constant 0 : index
    %c0_20 = arith.constant 0 : index
    %19 = vector.load %arg8[%c0_17, %c0_18, %c0_19, %c0_20] : memref<2x10x10x128xbf16, #tpu.memory_space<vmem>>, vector<2x8x8x128xbf16>
    %20 = vector.shape_cast %19 : vector<2x8x8x128xbf16> to vector<128x128xbf16>
    %c0_21 = arith.constant 0 : index
    %c0_22 = arith.constant 0 : index
    %c0_23 = arith.constant 0 : index
    %c0_24 = arith.constant 0 : index
    %21 = vector.load %arg4[%c0_21, %c0_22, %c0_23, %c0_24] : memref<3x3x128x128xbf16, #tpu.memory_space<vmem>>, vector<1x1x128x128xbf16>
    %22 = vector.shape_cast %21 : vector<1x1x128x128xbf16> to vector<128x128xbf16>
    %cst_25 = arith.constant dense<0.000000e+00> : vector<128x128xf32>
    %23 = tpu.matmul %20, %22, %cst_25 {dimension_numbers = #tpu.dot_dimension_numbers<[1], [0], [0], [1], [0, 0, 1, 1], [], []>} : vector<128x128xbf16>, vector<128x128xbf16>, vector<128x128xf32> -> vector<128x128xf32>
    %24 = arith.addf %18, %23 : vector<128x128xf32>
    %c0_26 = arith.constant 0 : index
    %c0_27 = arith.constant 0 : index
    %c1_28 = arith.constant 1 : index
    %c0_29 = arith.constant 0 : index
    %25 = vector.load %arg8[%c0_26, %c0_27, %c1_28, %c0_29] : memref<2x10x10x128xbf16, #tpu.memory_space<vmem>>, vector<2x8x8x128xbf16>
    %26 = vector.shape_cast %25 : vector<2x8x8x128xbf16> to vector<128x128xbf16>
    %c0_30 = arith.constant 0 : index
    %c1_31 = arith.constant 1 : index
    %c0_32 = arith.constant 0 : index
    %c0_33 = arith.constant 0 : index
    %27 = vector.load %arg4[%c0_30, %c1_31, %c0_32, %c0_33] : memref<3x3x128x128xbf16, #tpu.memory_space<vmem>>, vector<1x1x128x128xbf16>
    %28 = vector.shape_cast %27 : vector<1x1x128x128xbf16> to vector<128x128xbf16>
    %cst_34 = arith.constant dense<0.000000e+00> : vector<128x128xf32>
    %29 = tpu.matmul %26, %28, %cst_34 {dimension_numbers = #tpu.dot_dimension_numbers<[1], [0], [0], [1], [0, 0, 1, 1], [], []>} : vector<128x128xbf16>, vector<128x128xbf16>, vector<128x128xf32> -> vector<128x128xf32>
    %30 = arith.addf %24, %29 : vector<128x128xf32>
    %c0_35 = arith.constant 0 : index
    %c0_36 = arith.constant 0 : index
    %c2 = arith.constant 2 : index
    %c0_37 = arith.constant 0 : index
    %31 = vector.load %arg8[%c0_35, %c0_36, %c2, %c0_37] : memref<2x10x10x128xbf16, #tpu.memory_space<vmem>>, vector<2x8x8x128xbf16>
    %32 = vector.shape_cast %31 : vector<2x8x8x128xbf16> to vector<128x128xbf16>
    %c0_38 = arith.constant 0 : index
    %c2_39 = arith.constant 2 : index
    %c0_40 = arith.constant 0 : index
    %c0_41 = arith.constant 0 : index
    %33 = vector.load %arg4[%c0_38, %c2_39, %c0_40, %c0_41] : memref<3x3x128x128xbf16, #tpu.memory_space<vmem>>, vector<1x1x128x128xbf16>
    %34 = vector.shape_cast %33 : vector<1x1x128x128xbf16> to vector<128x128xbf16>
    %cst_42 = arith.constant dense<0.000000e+00> : vector<128x128xf32>
    %35 = tpu.matmul %32, %34, %cst_42 {dimension_numbers = #tpu.dot_dimension_numbers<[1], [0], [0], [1], [0, 0, 1, 1], [], []>} : vector<128x128xbf16>, vector<128x128xbf16>, vector<128x128xf32> -> vector<128x128xf32>
    %36 = arith.addf %30, %35 : vector<128x128xf32>
    %c0_43 = arith.constant 0 : index
    %c1_44 = arith.constant 1 : index
    %c0_45 = arith.constant 0 : index
    %c0_46 = arith.constant 0 : index
    %37 = vector.load %arg8[%c0_43, %c1_44, %c0_45, %c0_46] : memref<2x10x10x128xbf16, #tpu.memory_space<vmem>>, vector<2x8x8x128xbf16>
    %38 = vector.shape_cast %37 : vector<2x8x8x128xbf16> to vector<128x128xbf16>
    %c1_47 = arith.constant 1 : index
    %c0_48 = arith.constant 0 : index
    %c0_49 = arith.constant 0 : index
    %c0_50 = arith.constant 0 : index
    %39 = vector.load %arg4[%c1_47, %c0_48, %c0_49, %c0_50] : memref<3x3x128x128xbf16, #tpu.memory_space<vmem>>, vector<1x1x128x128xbf16>
    %40 = vector.shape_cast %39 : vector<1x1x128x128xbf16> to vector<128x128xbf16>
    %cst_51 = arith.constant dense<0.000000e+00> : vector<128x128xf32>
    %41 = tpu.matmul %38, %40, %cst_51 {dimension_numbers = #tpu.dot_dimension_numbers<[1], [0], [0], [1], [0, 0, 1, 1], [], []>} : vector<128x128xbf16>, vector<128x128xbf16>, vector<128x128xf32> -> vector<128x128xf32>
    %42 = arith.addf %36, %41 : vector<128x128xf32>
    %c0_52 = arith.constant 0 : index
    %c1_53 = arith.constant 1 : index
    %c1_54 = arith.constant 1 : index
    %c0_55 = arith.constant 0 : index
    %43 = vector.load %arg8[%c0_52, %c1_53, %c1_54, %c0_55] : memref<2x10x10x128xbf16, #tpu.memory_space<vmem>>, vector<2x8x8x128xbf16>
    %44 = vector.shape_cast %43 : vector<2x8x8x128xbf16> to vector<128x128xbf16>
    %c1_56 = arith.constant 1 : index
    %c1_57 = arith.constant 1 : index
    %c0_58 = arith.constant 0 : index
    %c0_59 = arith.constant 0 : index
    %45 = vector.load %arg4[%c1_56, %c1_57, %c0_58, %c0_59] : memref<3x3x128x128xbf16, #tpu.memory_space<vmem>>, vector<1x1x128x128xbf16>
    %46 = vector.shape_cast %45 : vector<1x1x128x128xbf16> to vector<128x128xbf16>
    %cst_60 = arith.constant dense<0.000000e+00> : vector<128x128xf32>
    %47 = tpu.matmul %44, %46, %cst_60 {dimension_numbers = #tpu.dot_dimension_numbers<[1], [0], [0], [1], [0, 0, 1, 1], [], []>} : vector<128x128xbf16>, vector<128x128xbf16>, vector<128x128xf32> -> vector<128x128xf32>
    %48 = arith.addf %42, %47 : vector<128x128xf32>
    %c0_61 = arith.constant 0 : index
    %c1_62 = arith.constant 1 : index
    %c2_63 = arith.constant 2 : index
    %c0_64 = arith.constant 0 : index
    %49 = vector.load %arg8[%c0_61, %c1_62, %c2_63, %c0_64] : memref<2x10x10x128xbf16, #tpu.memory_space<vmem>>, vector<2x8x8x128xbf16>
    %50 = vector.shape_cast %49 : vector<2x8x8x128xbf16> to vector<128x128xbf16>
    %c1_65 = arith.constant 1 : index
    %c2_66 = arith.constant 2 : index
    %c0_67 = arith.constant 0 : index
    %c0_68 = arith.constant 0 : index
    %51 = vector.load %arg4[%c1_65, %c2_66, %c0_67, %c0_68] : memref<3x3x128x128xbf16, #tpu.memory_space<vmem>>, vector<1x1x128x128xbf16>
    %52 = vector.shape_cast %51 : vector<1x1x128x128xbf16> to vector<128x128xbf16>
    %cst_69 = arith.constant dense<0.000000e+00> : vector<128x128xf32>
    %53 = tpu.matmul %50, %52, %cst_69 {dimension_numbers = #tpu.dot_dimension_numbers<[1], [0], [0], [1], [0, 0, 1, 1], [], []>} : vector<128x128xbf16>, vector<128x128xbf16>, vector<128x128xf32> -> vector<128x128xf32>
    %54 = arith.addf %48, %53 : vector<128x128xf32>
    %c0_70 = arith.constant 0 : index
    %c2_71 = arith.constant 2 : index
    %c0_72 = arith.constant 0 : index
    %c0_73 = arith.constant 0 : index
    %55 = vector.load %arg8[%c0_70, %c2_71, %c0_72, %c0_73] : memref<2x10x10x128xbf16, #tpu.memory_space<vmem>>, vector<2x8x8x128xbf16>
    %56 = vector.shape_cast %55 : vector<2x8x8x128xbf16> to vector<128x128xbf16>
    %c2_74 = arith.constant 2 : index
    %c0_75 = arith.constant 0 : index
    %c0_76 = arith.constant 0 : index
    %c0_77 = arith.constant 0 : index
    %57 = vector.load %arg4[%c2_74, %c0_75, %c0_76, %c0_77] : memref<3x3x128x128xbf16, #tpu.memory_space<vmem>>, vector<1x1x128x128xbf16>
    %58 = vector.shape_cast %57 : vector<1x1x128x128xbf16> to vector<128x128xbf16>
    %cst_78 = arith.constant dense<0.000000e+00> : vector<128x128xf32>
    %59 = tpu.matmul %56, %58, %cst_78 {dimension_numbers = #tpu.dot_dimension_numbers<[1], [0], [0], [1], [0, 0, 1, 1], [], []>} : vector<128x128xbf16>, vector<128x128xbf16>, vector<128x128xf32> -> vector<128x128xf32>
    %60 = arith.addf %54, %59 : vector<128x128xf32>
    %c0_79 = arith.constant 0 : index
    %c2_80 = arith.constant 2 : index
    %c1_81 = arith.constant 1 : index
    %c0_82 = arith.constant 0 : index
    %61 = vector.load %arg8[%c0_79, %c2_80, %c1_81, %c0_82] : memref<2x10x10x128xbf16, #tpu.memory_space<vmem>>, vector<2x8x8x128xbf16>
    %62 = vector.shape_cast %61 : vector<2x8x8x128xbf16> to vector<128x128xbf16>
    %c2_83 = arith.constant 2 : index
    %c1_84 = arith.constant 1 : index
    %c0_85 = arith.constant 0 : index
    %c0_86 = arith.constant 0 : index
    %63 = vector.load %arg4[%c2_83, %c1_84, %c0_85, %c0_86] : memref<3x3x128x128xbf16, #tpu.memory_space<vmem>>, vector<1x1x128x128xbf16>
    %64 = vector.shape_cast %63 : vector<1x1x128x128xbf16> to vector<128x128xbf16>
    %cst_87 = arith.constant dense<0.000000e+00> : vector<128x128xf32>
    %65 = tpu.matmul %62, %64, %cst_87 {dimension_numbers = #tpu.dot_dimension_numbers<[1], [0], [0], [1], [0, 0, 1, 1], [], []>} : vector<128x128xbf16>, vector<128x128xbf16>, vector<128x128xf32> -> vector<128x128xf32>
    %66 = arith.addf %60, %65 : vector<128x128xf32>
    %c0_88 = arith.constant 0 : index
    %c2_89 = arith.constant 2 : index
    %c2_90 = arith.constant 2 : index
    %c0_91 = arith.constant 0 : index
    %67 = vector.load %arg8[%c0_88, %c2_89, %c2_90, %c0_91] : memref<2x10x10x128xbf16, #tpu.memory_space<vmem>>, vector<2x8x8x128xbf16>
    %68 = vector.shape_cast %67 : vector<2x8x8x128xbf16> to vector<128x128xbf16>
    %c2_92 = arith.constant 2 : index
    %c2_93 = arith.constant 2 : index
    %c0_94 = arith.constant 0 : index
    %c0_95 = arith.constant 0 : index
    %69 = vector.load %arg4[%c2_92, %c2_93, %c0_94, %c0_95] : memref<3x3x128x128xbf16, #tpu.memory_space<vmem>>, vector<1x1x128x128xbf16>
    %70 = vector.shape_cast %69 : vector<1x1x128x128xbf16> to vector<128x128xbf16>
    %cst_96 = arith.constant dense<0.000000e+00> : vector<128x128xf32>
    %71 = tpu.matmul %68, %70, %cst_96 {dimension_numbers = #tpu.dot_dimension_numbers<[1], [0], [0], [1], [0, 0, 1, 1], [], []>} : vector<128x128xbf16>, vector<128x128xbf16>, vector<128x128xf32> -> vector<128x128xf32>
    %72 = arith.addf %66, %71 : vector<128x128xf32>
    %c0_97 = arith.constant 0 : index
    %c0_98 = arith.constant 0 : index
    %73 = vector.load %arg5[%c0_97, %c0_98] : memref<1x128xf32, #tpu.memory_space<vmem>>, vector<1x128xf32>
    %74 = vector.broadcast %73 : vector<1x128xf32> to vector<128x128xf32>
    %75 = arith.addf %72, %74 : vector<128x128xf32>
    %76 = arith.addf %75, %12 : vector<128x128xf32>
    %cst_99 = arith.constant 0.000000e+00 : f32
    %77 = vector.broadcast %cst_99 : f32 to vector<128x128xf32>
    %78 = arith.maximumf %76, %77 : vector<128x128xf32>
    %c0_100 = arith.constant 0 : index
    %c0_101 = arith.constant 0 : index
    %79 = vector.load %arg7[%c0_100, %c0_101] : memref<128x128xf32, #tpu.memory_space<vmem>>, vector<128x128xf32>
    tpu.vector_store %arg7[%c0_100, %c0_101], %78 {strides = array<i32>} : memref<128x128xf32, #tpu.memory_space<vmem>>, vector<128x128xf32>,
    return
  }
  func.func @transform_0(%arg0: i32) -> (i32, i32) {
    %c0_i32 = arith.constant 0 : i32
    %c0_i32_0 = arith.constant 0 : i32
    return %arg0, %c0_i32 : i32, i32
  }
  func.func @transform_1(%arg0: i32) -> (i32, i32) {
    %c0_i32 = arith.constant 0 : i32
    %c0_i32_0 = arith.constant 0 : i32
    %c0_i32_1 = arith.constant 0 : i32
    return %c0_i32, %c0_i32_0 : i32, i32
  }
  func.func @transform_2(%arg0: i32) -> (i32, i32) {
    %c0_i32 = arith.constant 0 : i32
    %c0_i32_0 = arith.constant 0 : i32
    %c0_i32_1 = arith.constant 0 : i32
    return %c0_i32, %c0_i32_0 : i32, i32
  }
  func.func @transform_3(%arg0: i32) -> (i32, i32, i32, i32) {
    %c0_i32 = arith.constant 0 : i32
    %c0_i32_0 = arith.constant 0 : i32
    %c0_i32_1 = arith.constant 0 : i32
    %c0_i32_2 = arith.constant 0 : i32
    %c0_i32_3 = arith.constant 0 : i32
    return %c0_i32, %c0_i32_0, %c0_i32_1, %c0_i32_2 : i32, i32, i32, i32
  }
  func.func @transform_4(%arg0: i32) -> (i32, i32) {
    %c0_i32 = arith.constant 0 : i32
    %c0_i32_0 = arith.constant 0 : i32
    %c0_i32_1 = arith.constant 0 : i32
    return %c0_i32, %c0_i32_0 : i32, i32
  }
  func.func @transform_5(%arg0: i32) -> (i32, i32) {
    %c0_i32 = arith.constant 0 : i32
    %c0_i32_0 = arith.constant 0 : i32
    %c0_i32_1 = arith.constant 0 : i32
    return %c0_i32, %c0_i32_0 : i32, i32
  }
  func.func @transform_6(%arg0: i32) -> (i32, i32) {
    %c0_i32 = arith.constant 0 : i32
    %c0_i32_0 = arith.constant 0 : i32
    return %arg0, %c0_i32 : i32, i32
  }
}

</mosaic_0001>

<bundles_post_ra>
// kernel: tpu_custom_call.1
= control target key start
LH: loop header
LB: loop body
LE: loop exit
PB: predicated region body
PF: predicated region fallthrough
CT: control target
= control target key end

     0   :  { %11 = vsyncpa [#allocation4], 0  ;;  %s5885_s0 = inlined_call_operand.hbm [shape: bf16[128,128], index: 0, kind: input, shape index: {}]   ;;  %s5886_s1 = inlined_call_operand.hbm [shape: bf16[128,256], index: 1, kind: input, shape index: {}]   ;;  %s5887_s2 = inlined_call_operand.vmem [shape: f32[1,128], index: 2, kind: input, shape index: {}]   ;;  %s5888_s3 = inlined_call_operand.hbm [shape: bf16[3,3,128,128], index: 3, kind: input, shape index: {}]   ;;  %s5889_s4 = inlined_call_operand.vmem [shape: f32[1,128], index: 4, kind: input, shape index: {}]   ;;  %s5890_s5 = inlined_call_operand.vmem [shape: f32[1,128], index: 5, kind: input, shape index: {}]   ;;  %s5891_s6 = inlined_call_operand.hbm [shape: f32[128,128], index: 6, kind: output, shape index: {}]  }
   0x1   :  { %12 = vsyncpa [#allocation7], 0 }
   0x2   :  { %13 = vsyncpa [#allocation5], 0  ;;  %s4973_s21 = smov [#allocation6]   ;;  %s4879_s25 = scalar_lea.hbm %s5886_s1, 2048 }
   0x3   :  { %s31_s22 = sshll.u32 %s4973_s21, 4  ;;  %p4880_p0 = scmp.ne.s32.totalorder %s5886_s1, %s4879_s25  ;;  %s32_s22 = int_to_ptr.vmem [resolvable:$true] %s31_s22 }
   0x4   :  { %p4883_p1 = scmp.lt.u32.totalorder %s4879_s25, %s5886_s1 }
   0x6   :  { %p4885_p2 = pnand %p4883_p1, %p4880_p0 }
   0x8   :  { %4888 = shalt.err (!%p4885_p2)
}
   0x9   :  { %s4889_s30 = scalar_lea.vmem %s32_s22, 2048  ;;  %p4894_p4 = scmp.lt.s32.totalorder %s32_s22, %s32_s22 }
   0xa   :  { %p4890_p3 = scmp.ne.s32.totalorder %s32_s22, %s4889_s30  ;;  %p4895_p5 = scmp.lt.s32.totalorder %s4889_s30, %s4889_s30 }
   0xc   :  { %p4896_p6 = por %p4895_p5, %p4894_p4 }
   0xe   :  { %p4897_p7 = pnand %p4896_p6, %p4890_p3 }
  0x10   :  { %4900 = shalt.err (!%p4897_p7)
}
  0x11   :  { %s4974_s7 = smov 128   ;;  %s4975_s8 = smov 8  }
  0x12   :  { %37 = dma.hbm_to_vmem [thread:$0]  %s5886_s1, 2048, %s32_s22, [#allocation7], %s4974_s7, %s4974_s7, %s4975_s8  }
  0x13   :  { %s4976_s11 = smov [#allocation3]   ;;  %s4901_s15 = scalar_lea.hbm %s5885_s0, 1024 }
  0x14   :  { %s19_s12 = sshll.u32 %s4976_s11, 4  ;;  %p4902_p8 = scmp.ne.s32.totalorder %s5885_s0, %s4901_s15  ;;  %s20_s12 = int_to_ptr.vmem [resolvable:$true] %s19_s12 }
  0x15   :  { %p4905_p9 = scmp.lt.u32.totalorder %s4901_s15, %s5885_s0 }
  0x17   :  { %p4907_p10 = pnand %p4905_p9, %p4902_p8 }
  0x19   :  { %4910 = shalt.err (!%p4907_p10)
}
  0x1a   :  { %s4911_s20 = scalar_lea.vmem %s20_s12, 1024  ;;  %p4916_p12 = scmp.lt.s32.totalorder %s20_s12, %s20_s12 }
  0x1b   :  { %p4912_p11 = scmp.ne.s32.totalorder %s20_s12, %s4911_s20  ;;  %p4917_p13 = scmp.lt.s32.totalorder %s4911_s20, %s4911_s20 }
  0x1d   :  { %p4918_p0 = por %p4917_p13, %p4916_p12 }
  0x1f   :  { %p4919_p1 = pnand %p4918_p0, %p4912_p11 }
  0x21   :  { %4922 = shalt.err (!%p4919_p1)
}
  0x22   :  { %s4977_s1 = smov 64   ;;  %s4978_s21 = smov 4  }
  0x23   :  { %25 = dma.hbm_to_vmem [thread:$0]  %s5885_s0, 1024, %s20_s12, [#allocation4], %s4977_s1, %s4977_s1, %s4978_s21  }
  0x24   :  { %s4979_s24 = smov [#allocation8]   ;;  %s4923_s28 = scalar_lea.hbm %s5888_s3, 9216 }
  0x25   :  { %s45_s25 = sshll.u32 %s4979_s24, 4  ;;  %p4924_p2 = scmp.ne.s32.totalorder %s5888_s3, %s4923_s28  ;;  %s46_s25 = int_to_ptr.vmem [resolvable:$true] %s45_s25 }
  0x26   :  { %p4927_p3 = scmp.lt.u32.totalorder %s4923_s28, %s5888_s3 }
  0x28   :  { %p4929_p4 = pnand %p4927_p3, %p4924_p2 }
  0x2a   :  { %4932 = shalt.err (!%p4929_p4)
}
  0x2b   :  { %s4933_s11 = scalar_lea.vmem %s46_s25, 9216  ;;  %p4938_p6 = scmp.lt.s32.totalorder %s46_s25, %s46_s25 }
  0x2c   :  { %p4934_p5 = scmp.ne.s32.totalorder %s46_s25, %s4933_s11  ;;  %p4939_p7 = scmp.lt.s32.totalorder %s4933_s11, %s4933_s11 }
  0x2e   :  { %p4940_p8 = por %p4939_p7, %p4938_p6 }
  0x30   :  { %p4941_p9 = pnand %p4940_p8, %p4934_p5 }
  0x32   :  { %4944 = shalt.err (!%p4941_p9)
}
  0x33   :  { %51 = dma.hbm_to_vmem [thread:$0]  %s5888_s3, 9216, %s46_s25, [#allocation7], %s4977_s1, %s4977_s1, %s4978_s21  }
  0x34   :  { %4967 = dma.done.wait [#allocation4], 1024  }
  0x35   :  { %4968 = vsyncadd [#allocation4], 4294966272 }
  0x36   :  { %4969 = dma.done.wait [#allocation7], 11264  }
  0x37   :  { %4970 = vsyncadd [#allocation7], 4294956032  ;;  %v4980_v0 = vmov 0   ;;  %v4741_v1 = vld [vmem:[#allocation6 + $0x4] ss:$8 sps:$4 sm:$0xff]   ;;  %v4767_v19 = vld [vmem:[#allocation3 + $0x10] sm:$0xff]  }
  0x38   :  { %258 = vmatprep.mubr.bf16.mxu0 %v4980_v0  ;;  %401 = vst [vmem:[#allocation2] sm:$0xf] %v4980_v0  ;;  %402 = vst [vmem:[#allocation2 + $0x4] sm:$0x1] %v4980_v0  ;;  %v4743_v2 = vld [vmem:[#allocation6] ss:$8 sps:$4 sm:$0xff]   ;;  %226 = vmatprep.subr.bf16.mxu0 %v4741_v1 }
  0x39   :  { %403 = vst [vmem:[#allocation2 + $0x8] sm:$0xf] %v4980_v0  ;;  %404 = vst [vmem:[#allocation2 + $0xc] sm:$0x1] %v4980_v0  ;;  %v4744_v3 = vld [vmem:[#allocation6 + $0x14] ss:$8 sps:$4 sm:$0xff]   ;;  %227 = vmatpush1.bf16.msra.mxu0 %v4743_v2 }
  0x3a   :  { %405 = vst [vmem:[#allocation2 + $0x10] sm:$0xf] %v4980_v0  ;;  %406 = vst [vmem:[#allocation2 + $0x14] sm:$0x1] %v4980_v0  ;;  %v4746_v4 = vld [vmem:[#allocation6 + $0x10] ss:$8 sps:$4 sm:$0xff]   ;;  %228 = vmatprep.subr.bf16.mxu0 %v4744_v3 }
  0x3b   :  { %407 = vst [vmem:[#allocation2 + $0x18] sm:$0xf] %v4980_v0  ;;  %408 = vst [vmem:[#allocation2 + $0x1c] sm:$0x1] %v4980_v0  ;;  %v4747_v5 = vld [vmem:[#allocation6 + $0x24] ss:$8 sps:$4 sm:$0xff]  }
  0x3c   :  { %409 = vst [vmem:[#allocation2 + $0x20] sm:$0xf] %v4980_v0  ;;  %410 = vst [vmem:[#allocation2 + $0x24] sm:$0x1] %v4980_v0  ;;  %v4749_v6 = vld [vmem:[#allocation6 + $0x20] ss:$8 sps:$4 sm:$0xff]  }
  0x3d   :  { %411 = vst [vmem:[#allocation2 + $0x28] sm:$0xf] %v4980_v0  ;;  %412 = vst [vmem:[#allocation2 + $0x2c] sm:$0x1] %v4980_v0  ;;  %229 = vmatpush1.bf16.msra.mxu0 %v4746_v4  ;;  %v4750_v7 = vld [vmem:[#allocation6 + $0x34] ss:$8 sps:$4 sm:$0xff]  }
  0x3e   :  { %413 = vst [vmem:[#allocation2 + $0x30] sm:$0xf] %v4980_v0  ;;  %414 = vst [vmem:[#allocation2 + $0x34] sm:$0x1] %v4980_v0  ;;  %230 = vmatprep.subr.bf16.mxu0 %v4747_v5  ;;  %v4752_v8 = vld [vmem:[#allocation6 + $0x30] ss:$8 sps:$4 sm:$0xff]  }
  0x3f   :  { %415 = vst [vmem:[#allocation2 + $0x38] sm:$0xf] %v4980_v0  ;;  %416 = vst [vmem:[#allocation2 + $0x3c] sm:$0x1] %v4980_v0  ;;  %v4753_v9 = vld [vmem:[#allocation6 + $0x44] ss:$8 sps:$4 sm:$0xff]  }
  0x40   :  { %417 = vst [vmem:[#allocation2 + $0x40] sm:$0xf] %v4980_v0  ;;  %418 = vst [vmem:[#allocation2 + $0x44] sm:$0x1] %v4980_v0  ;;  %v4755_v10 = vld [vmem:[#allocation6 + $0x40] ss:$8 sps:$4 sm:$0xff]  }
  0x41   :  { %419 = vst [vmem:[#allocation2 + $0x48] sm:$0xf] %v4980_v0  ;;  %420 = vst [vmem:[#allocation2 + $0x4c] sm:$0x1] %v4980_v0  ;;  %231 = vmatpush1.bf16.msra.mxu0 %v4749_v6  ;;  %v4756_v11 = vld [vmem:[#allocation6 + $0x54] ss:$8 sps:$4 sm:$0xff]  }
  0x42   :  { %421 = vst [vmem:[#allocation2 + $0x50] sm:$0xf] %v4980_v0  ;;  %422 = vst [vmem:[#allocation2 + $0x54] sm:$0x1] %v4980_v0  ;;  %232 = vmatprep.subr.bf16.mxu0 %v4750_v7  ;;  %v4758_v12 = vld [vmem:[#allocation6 + $0x50] ss:$8 sps:$4 sm:$0xff]  }
  0x43   :  { %423 = vst [vmem:[#allocation2 + $0x58] sm:$0xf] %v4980_v0  ;;  %424 = vst [vmem:[#allocation2 + $0x5c] sm:$0x1] %v4980_v0  ;;  %v4759_v13 = vld [vmem:[#allocation6 + $0x64] ss:$8 sps:$4 sm:$0xff]  }
  0x44   :  { %425 = vst [vmem:[#allocation2 + $0x60] sm:$0xf] %v4980_v0  ;;  %426 = vst [vmem:[#allocation2 + $0x64] sm:$0x1] %v4980_v0  ;;  %v4761_v14 = vld [vmem:[#allocation6 + $0x60] ss:$8 sps:$4 sm:$0xff]  }
  0x45   :  { %427 = vst [vmem:[#allocation2 + $0x68] sm:$0xf] %v4980_v0  ;;  %428 = vst [vmem:[#allocation2 + $0x6c] sm:$0x1] %v4980_v0  ;;  %233 = vmatpush1.bf16.msra.mxu0 %v4752_v8  ;;  %v4762_v15 = vld [vmem:[#allocation6 + $0x74] ss:$8 sps:$4 sm:$0xff]  }
  0x46   :  { %429 = vst [vmem:[#allocation2 + $0x70] sm:$0xf] %v4980_v0  ;;  %430 = vst [vmem:[#allocation2 + $0x74] sm:$0x1] %v4980_v0  ;;  %234 = vmatprep.subr.bf16.mxu0 %v4753_v9  ;;  %v4764_v16 = vld [vmem:[#allocation6 + $0x70] ss:$8 sps:$4 sm:$0xff]  }
  0x47   :  { %431 = vst [vmem:[#allocation2 + $0x78] sm:$0xf] %v4980_v0  ;;  %432 = vst [vmem:[#allocation2 + $0x7c] sm:$0x1] %v4980_v0  ;;  %v4765_v17 = vld [vmem:[#allocation3] sm:$0xff]   ;;  %v4766_v18 = vld [vmem:[#allocation3 + $0x8] sm:$0xff]  }
  0x48   :  { %433 = vst [vmem:[#allocation2 + $0x80] sm:$0xf] %v4980_v0  ;;  %434 = vst [vmem:[#allocation2 + $0x84] sm:$0x1] %v4980_v0  ;;  %v4768_v20 = vld [vmem:[#allocation3 + $0x18] sm:$0xff]   ;;  %v4769_v21 = vld [vmem:[#allocation3 + $0x20] sm:$0xff]  }
  0x49   :  { %435 = vst [vmem:[#allocation2 + $0x88] sm:$0xf] %v4980_v0  ;;  %436 = vst [vmem:[#allocation2 + $0x8c] sm:$0x1] %v4980_v0  ;;  %235 = vmatpush1.bf16.msra.mxu0 %v4755_v10  ;;  %v4770_v22 = vld [vmem:[#allocation3 + $0x28] sm:$0xff]   ;;  %v4771_v23 = vld [vmem:[#allocation3 + $0x30] sm:$0xff]  }
  0x4a   :  { %437 = vst [vmem:[#allocation2 + $0x90] sm:$0xf] %v4980_v0  ;;  %438 = vst [vmem:[#allocation2 + $0x94] sm:$0x1] %v4980_v0  ;;  %236 = vmatprep.subr.bf16.mxu0 %v4756_v11  ;;  %v4772_v24 = vld [vmem:[#allocation3 + $0x38] sm:$0xff]   ;;  %v4773_v25 = vld [vmem:[#allocation8 + $0xc0] sm:$0xff]  }
  0x4b   :  { %439 = vst [vmem:[#allocation2 + $0x98] sm:$0xf] %v4980_v0  ;;  %440 = vst [vmem:[#allocation2 + $0x9c] sm:$0x1] %v4980_v0  ;;  %4396 = vmatprep.subr.bf16.mxu1 %v4773_v25  ;;  %v4774_v26 = vld [vmem:[#allocation8 + $0xc8] sm:$0xff]   ;;  %v4775_v27 = vld [vmem:[#allocation8 + $0x40] sm:$0xff]  }
  0x4c   :  { %4397 = vmatpush3.bf16.msra.mxu1 %v4773_v25  ;;  %v4776_v28 = vld [vmem:[#allocation8 + $0xd0] sm:$0xff]   ;;  %v4777_v29 = vld [vmem:[#allocation8 + $0x48] sm:$0xff]   ;;  %v4778_v30 = vld [vmem:[#allocation8 + $0xd8] sm:$0xff]   ;;  %vm666_vm0 = vcmask 1043456   ;;  %vm667_vm1 = vsmask.f32 7938 }
  0x4d   :  { %237 = vmatpush1.bf16.msra.mxu0 %v4758_v12  ;;  %4398 = vmatprep.subr.bf16.mxu1 %v4774_v26  ;;  %v4779_v31 = vld [vmem:[#allocation8 + $0x50] sm:$0xff]   ;;  %v4780_v32 = vld [vmem:[#allocation8 + $0xe0] sm:$0xff]   ;;  %v4781_v33 = vld [vmem:[#allocation8 + $0x58] sm:$0xff]   ;;  %vm672_vm2 = vcmask 1040384   ;;  %vm673_vm3 = vsmask.f32 256 }
  0x4e   :  { %238 = vmatprep.subr.bf16.mxu0 %v4759_v13  ;;  %v4782_v34 = vld [vmem:[#allocation8 + $0xe8] sm:$0xff]   ;;  %v4783_v35 = vld [vmem:[#allocation8 + $0x60] sm:$0xff]   ;;  %v4784_v36 = vld [vmem:[#allocation8 + $0xf0] sm:$0xff]   ;;  %vm816_vm6 = vsmask.f32 3328  ;;  %vm1478_vm9 = vcmask 1042432  }
  0x4f   :  { %v4786_v37 = vld [vmem:[#allocation8 + $0x68] sm:$0xff]   ;;  %v4787_v38 = vld [vmem:[#allocation8 + $0xf8] sm:$0xff]   ;;  %v4788_v39 = vld [vmem:[#allocation8 + $0x70] sm:$0xff]   ;;  %vm817_vm7 = vsmask.f32 7440  ;;  %vm1479_vm10 = vcmask 1046532  }
  0x50   :  { %4399 = vmatpush3.bf16.msra.mxu1 %v4774_v26  ;;  %v4790_v40 = vld [vmem:[#allocation8 + $0x78] sm:$0xff]   ;;  %v5104_v41 = vld [vmem:[#allocation8 + $0x100] sm:$0xff]   ;;  %vm5125_vm4 = vmand %vm666_vm0, %vm667_vm1 }
  0x51   :  { %239 = vmatpush1.bf16.msra.mxu0 %v4761_v14  ;;  %4400 = vmatprep.subr.bf16.mxu1 %v4776_v28  ;;  %v5107_v42 = vld [vmem:[#allocation8] sm:$0xff]   ;;  %v669_v62 = vld [vmem:[#allocation2 + $0x8] sm:$0xf]  ;;  %vm5132_vm5 = vmand %vm672_vm2, %vm673_vm3 }
  0x52   :  { %240 = vmatprep.subr.bf16.mxu0 %v4762_v15  ;;  %v5113_v43 = vld [vmem:[%s5887_s2] ss:$0 sm:$0xff]  ;;  %v675_v3 = vld [vmem:[#allocation2 + $0xc] sm:$0x1]  ;;  %v678_v13 = vld [vmem:[#allocation2 + $0x10] sm:$0xf] }
  0x53   :  { %v5121_v51 = vld [vmem:[#allocation2] sm:$0xf]  ;;  %v681_v14 = vld [vmem:[#allocation2 + $0x14] sm:$0x1]  ;;  %vm5164_vm8 = vmor %vm816_vm6, %vm817_vm7 }
  0x54   :  { %4401 = vmatpush3.bf16.msra.mxu1 %v4776_v28  ;;  %v820_v54 = vshrl.u32 %v5121_v51, 16  ;;  %v823_v55 = vshll.u32 %v5121_v51, 16  ;;  %vm5504_vm11 = vmor %vm1478_vm9, %vm1479_vm10 }
  0x55   :  { %241 = vmatpush1.bf16.msra.mxu0 %v4764_v16  ;;  %4402 = vmatprep.subr.bf16.mxu1 %v4778_v30 }
  0x56   :  { %4300 = vmatprep.subr.bf16.mxu0 %v4775_v27  ;;  %v822_v6 = vrot.slane %v820_v54, 4  ;;  %v825_v7 = vrot.slane %v823_v55, 5  ;;  %v693_v55 = vld [vmem:[#allocation2 + $0x24] sm:$0x1] }
  0x58   :  { %259 = vmatmul.mubr.bf16.vlgmr.msra.gmra.mrb[0].mxu0 %v4765_v17  ;;  %4403 = vmatpush3.bf16.msra.mxu1 %v4778_v30  ;;  %v826_v25 = vor.u32 %v825_v7, %v822_v6  ;;  %v684_v30 = vld [vmem:[#allocation2 + $0x18] sm:$0xf] }
  0x59   :  { %268 = vmatprep.mubr.bf16.mxu0 %v4980_v0  ;;  %4301 = vmatpush3.bf16.msra.mxu0 %v4775_v27 }
  0x5a   :  { %4302 = vmatprep.subr.bf16.mxu0 %v4777_v29  ;;  %4404 = vmatprep.subr.bf16.mxu1 %v4780_v32 }
  0x5c   :  { %4405 = vmatpush3.bf16.msra.mxu1 %v4780_v32 }
  0x5d   :  { %4303 = vmatpush3.bf16.msra.mxu0 %v4777_v29  ;;  %4406 = vmatprep.subr.bf16.mxu1 %v4782_v34 }
  0x5e   :  { %4304 = vmatprep.subr.bf16.mxu0 %v4779_v31 }
  0x60   :  { %269 = vmatmul.mubr.bf16.gmra.mrb[4].mxu0 %v4766_v18  ;;  %4407 = vmatpush3.bf16.msra.mxu1 %v4782_v34 }
  0x61   :  { %278 = vmatprep.mubr.bf16.mxu0 %v4980_v0  ;;  %4305 = vmatpush3.bf16.msra.mxu0 %v4779_v31  ;;  %v687_v31 = vld [vmem:[#allocation2 + $0x1c] sm:$0x1] }
  0x62   :  { %4306 = vmatprep.subr.bf16.mxu0 %v4781_v33  ;;  %4408 = vmatprep.subr.bf16.mxu1 %v4784_v36 }
  0x64   :  { %4409 = vmatpush3.bf16.msra.mxu1 %v4784_v36 }
  0x65   :  { %4307 = vmatpush3.bf16.msra.mxu0 %v4781_v33  ;;  %4410 = vmatprep.subr.bf16.mxu1 %v4787_v38 }
  0x66   :  { %4308 = vmatprep.subr.bf16.mxu0 %v4783_v35 }
  0x68   :  { %279 = vmatmul.mubr.bf16.gmra.mrb[8].mxu0 %v4767_v19  ;;  %4411 = vmatpush3.bf16.msra.mxu1 %v4787_v38  ;;  %v5153_v38 = vld [vmem:[#allocation2 + $0x50] sm:$0xf] }
  0x69   :  { %288 = vmatprep.mubr.bf16.mxu0 %v4980_v0  ;;  %4309 = vmatpush3.bf16.msra.mxu0 %v4783_v35 }
  0x6a   :  { %4310 = vmatprep.subr.bf16.mxu0 %v4786_v37  ;;  %4428 = vmatprep.subr.bf16.mxu1 %v5104_v41 }
  0x6d   :  { %4311 = vmatpush3.bf16.msra.mxu0 %v4786_v37 }
  0x6e   :  { %4312 = vmatprep.subr.bf16.mxu0 %v4788_v39 }
  0x70   :  { %289 = vmatmul.mubr.bf16.gmra.mrb[12].mxu0 %v4768_v20 }
  0x71   :  { %298 = vmatprep.mubr.bf16.mxu0 %v4980_v0  ;;  %4313 = vmatpush3.bf16.msra.mxu0 %v4788_v39  ;;  %v690_v39 = vld [vmem:[#allocation2 + $0x20] sm:$0xf] }
  0x72   :  { %4314 = vmatprep.subr.bf16.mxu0 %v4790_v40 }
  0x75   :  { %4315 = vmatpush3.bf16.msra.mxu0 %v4790_v40 }
  0x76   :  { %4332 = vmatprep.subr.bf16.mxu0 %v5107_v42 }
  0x78   :  { %299 = vmatmul.mubr.bf16.gmra.mrb[16].mxu0 %v4769_v21 }
  0x79   :  { %308 = vmatprep.mubr.bf16.mxu0 %v4980_v0 }
  0x80   :  { %309 = vmatmul.mubr.bf16.gmra.mrb[20].mxu0 %v4770_v22  ;;  %v5143_v22 = vld [vmem:[#allocation2 + $0x4] sm:$0x1] }
  0x81   :  { %318 = vmatprep.mubr.bf16.mxu0 %v4980_v0  ;;  %v829_v26 = vshll.u32 %v5143_v22, 16 }
  0x88   :  { %319 = vmatmul.mubr.bf16.gmra.mrb[24].mxu0 %v4771_v23 }
  0x89   :  { %328 = vmatprep.mubr.bf16.mxu0 %v4980_v0 }
  0x90   :  { %329 = vmatmul.mubr.bf16.gmra.mrb[28].mxu0 %v4772_v24 }
 0x12b   :  { %v260_v44 = vpop.f32.mrb[0].mxu0 }
 0x12c   :  { %v346_v45 = vadd.f32 %v5113_v43, %v260_v44  ;;  %v5116_v46 = vpop.f32.mrb[1].mxu0 }
 0x12d   :  { %v264_v47 = vpop.f32.mrb[2].mxu0 }
 0x12e   :  { %v362_v48 = vmax.f32 %v346_v45, 0.0  ;;  %v347_v49 = vadd.f32 %v5113_v43, %v264_v47  ;;  %v5119_v50 = vpop.f32.mrb[3].mxu0  ;;  %v5158_v47 = vrot.slane %v826_v25, 4  ;;  %v702_v25 = vld [vmem:[#allocation2 + $0x30] sm:$0xf] }
 0x130   :  { %v4140_v52 = vpack.c.bf16 %v362_v48, %v362_v48  ;;  %v363_v53 = vmax.f32 %v347_v49, 0.0  ;;  %v5160_v48 = vrot.slane %v829_v26, 5 }
 0x132   :  { %v506_v56 = vshrl.u32 %v4140_v52, 16  ;;  %v4141_v57 = vpack.c.bf16 %v363_v53, %v363_v53  ;;  %v509_v60 = vshll.u32 %v4140_v52, 16 }
 0x133   :  { %v270_v58 = vpop.f32.mrb[4].mxu0 }
 0x134   :  { %v508_v59 = vrot.slane %v506_v56, 7  ;;  %v514_v63 = vshrl.u32 %v4141_v57, 16  ;;  %v348_v0 = vadd.f32 %v5113_v43, %v270_v58  ;;  %v5130_v1 = vpop.f32.mrb[5].mxu0  ;;  %v517_v4 = vshll.u32 %v4141_v57, 16 }
 0x135   :  { %v274_v5 = vpop.f32.mrb[6].mxu0 }
 0x136   :  { %v511_v8 = vor.u32 %v509_v60, %v508_v59  ;;  %v512_v9 = vrot.slane %v508_v59, 4  ;;  %v516_v10 = vrot.slane %v514_v63, 7  ;;  %v364_v11 = vmax.f32 %v348_v0, 0.0  ;;  %v5136_v12 = vpop.f32.mrb[7].mxu0 }
 0x137   :  { %v349_v15 = vadd.f32 %v5113_v43, %v274_v5  ;;  %v932_v60 = vshrl.u32 %v5153_v38, 16 }
 0x138   :  { %v670_v16 = vsel %vm5125_vm4, %v511_v8, %v669_v62  ;;  %v676_v17 = vsel %vm5132_vm5, %v512_v9, %v675_v3  ;;  %v519_v18 = vor.u32 %v517_v4, %v516_v10  ;;  %v520_v19 = vrot.slane %v516_v10, 4 }
 0x139   :  { %671 = vst [vmem:[#allocation2 + $0x8] sm:$0xf] %v670_v16  ;;  %677 = vst [vmem:[#allocation2 + $0xc] sm:$0x1] %v676_v17  ;;  %v4142_v20 = vpack.c.bf16 %v364_v11, %v364_v11  ;;  %v365_v21 = vmax.f32 %v349_v15, 0.0  ;;  %v832_v8 = vsel %vm5164_vm8, %v5158_v47, %v5160_v48  ;;  %v935_v9 = vshll.u32 %v5153_v38, 16 }
 0x13a   :  { %v679_v23 = vsel %vm5125_vm4, %v519_v18, %v678_v13  ;;  %v682_v24 = vsel %vm5132_vm5, %v520_v19, %v681_v14  ;;  %v696_v13 = vld [vmem:[#allocation2 + $0x28] sm:$0xf]  ;;  %v699_v19 = vld [vmem:[#allocation2 + $0x2c] sm:$0x1] }
 0x13b   :  { %680 = vst [vmem:[#allocation2 + $0x10] sm:$0xf] %v679_v23  ;;  %683 = vst [vmem:[#allocation2 + $0x14] sm:$0x1] %v682_v24  ;;  %v522_v27 = vshrl.u32 %v4142_v20, 16  ;;  %v4143_v28 = vpack.c.bf16 %v365_v21, %v365_v21  ;;  %v280_v29 = vpop.f32.mrb[8].mxu0 }
 0x13c   :  { %v350_v32 = vadd.f32 %v5113_v43, %v280_v29  ;;  %v5151_v33 = vpop.f32.mrb[9].mxu0  ;;  %v525_v35 = vshll.u32 %v4142_v20, 16 }
 0x13d   :  { %5896 = vst [vmem:[#allocation13_spill] sm:$0xff] %v5151_v33  ;;  %v524_v34 = vrot.slane %v522_v27, 7  ;;  %v530_v36 = vshrl.u32 %v4143_v28, 16  ;;  %v284_v37 = vpop.f32.mrb[10].mxu0  ;;  %v533_v54 = vshll.u32 %v4143_v28, 16 }
 0x13e   :  { %v366_v40 = vmax.f32 %v350_v32, 0.0  ;;  %v351_v44 = vadd.f32 %v5113_v43, %v284_v37  ;;  %v5156_v45 = vpop.f32.mrb[11].mxu0  ;;  %v705_v37 = vld [vmem:[#allocation2 + $0x34] sm:$0x1] }
 0x13f   :  { %5897 = vst [vmem:[#allocation14_spill] sm:$0xff] %v5156_v45  ;;  %v527_v49 = vor.u32 %v525_v35, %v524_v34  ;;  %v528_v52 = vrot.slane %v524_v34, 4  ;;  %v532_v53 = vrot.slane %v530_v36, 7  ;;  %v808_v36 = vld [vmem:[#allocation2 + $0x54] sm:$0x1] }
 0x140   :  { %v4144_v57 = vpack.c.bf16 %v366_v40, %v366_v40  ;;  %v367_v58 = vmax.f32 %v351_v44, 0.0  ;;  %v5168_v59 = vld [vmem:[#allocation2 + $0x8] sm:$0xf]  ;;  %v801_v4 = vld [vmem:[#allocation2 + $0xc] sm:$0x1]  ;;  %v5194_v44 = vrot.slane %v932_v60, 4 }
 0x141   :  { %v685_v62 = vsel %vm5125_vm4, %v527_v49, %v684_v30  ;;  %v688_v63 = vsel %vm5132_vm5, %v528_v52, %v687_v31  ;;  %v535_v0 = vor.u32 %v533_v54, %v532_v53  ;;  %v536_v3 = vrot.slane %v532_v53, 4 }
 0x142   :  { %686 = vst [vmem:[#allocation2 + $0x18] sm:$0xf] %v685_v62  ;;  %689 = vst [vmem:[#allocation2 + $0x1c] sm:$0x1] %v688_v63  ;;  %v538_v5 = vshrl.u32 %v4144_v57, 16  ;;  %v4145_v6 = vpack.c.bf16 %v367_v58, %v367_v58  ;;  %v834_v15 = vshrl.u32 %v5168_v59, 16 }
 0x143   :  { %v4785_v7 = vld [vmem:[#allocation2 + $0x8] ss:$8 sps:$4 sm:$0xff]   ;;  %v691_v10 = vsel %vm5125_vm4, %v535_v0, %v690_v39  ;;  %v694_v11 = vsel %vm5132_vm5, %v536_v3, %v693_v55  ;;  %v290_v14 = vpop.f32.mrb[12].mxu0  ;;  %v837_v16 = vshll.u32 %v5168_v59, 16  ;;  %v541_v18 = vshll.u32 %v4144_v57, 16 }
 0x144   :  { %692 = vst [vmem:[#allocation2 + $0x20] sm:$0xf] %v691_v10  ;;  %695 = vst [vmem:[#allocation2 + $0x24] sm:$0x1] %v694_v11  ;;  %v540_v17 = vrot.slane %v538_v5, 7  ;;  %v546_v20 = vshrl.u32 %v4145_v6, 16  ;;  %v352_v21 = vadd.f32 %v5113_v43, %v290_v14  ;;  %4412 = vmatprep.mubr.bf16.mxu1 %v4785_v7 }
 0x145   :  { %v5187_v23 = vpop.f32.mrb[13].mxu0  ;;  %v549_v24 = vshll.u32 %v4145_v6, 16  ;;  %v836_v27 = vrot.slane %v834_v15, 4  ;;  %v839_v28 = vrot.slane %v837_v16, 5  ;;  %v843_v29 = vshll.u32 %v801_v4, 16 }
 0x146   :  { %5900 = vst [vmem:[#allocation15_spill] sm:$0xff] %v5187_v23  ;;  %v294_v26 = vpop.f32.mrb[14].mxu0  ;;  %v543_v30 = vor.u32 %v541_v18, %v540_v17  ;;  %v544_v31 = vrot.slane %v540_v17, 4  ;;  %v548_v32 = vrot.slane %v546_v20, 7  ;;  %v368_v34 = vmax.f32 %v352_v21, 0.0 }
 0x147   :  { %v5189_v35 = vpop.f32.mrb[15].mxu0  ;;  %v353_v38 = vadd.f32 %v5113_v43, %v294_v26  ;;  %v840_v39 = vor.u32 %v839_v28, %v836_v27  ;;  %v5192_v40 = vld [vmem:[#allocation2 + $0x10] sm:$0xf]  ;;  %v941_v47 = vshll.u32 %v808_v36, 16  ;;  %v845_v58 = vrot.slane %v843_v29, 5 }
 0x148   :  { %5901 = vst [vmem:[#allocation16_spill] sm:$0xff] %v5189_v35  ;;  %v697_v48 = vsel %vm5125_vm4, %v543_v30, %v696_v13  ;;  %v700_v49 = vsel %vm5132_vm5, %v544_v31, %v699_v19  ;;  %v551_v52 = vor.u32 %v549_v24, %v548_v32  ;;  %v552_v53 = vrot.slane %v548_v32, 4  ;;  %v708_v10 = vld [vmem:[#allocation2 + $0x38] sm:$0xf]  ;;  %v711_v11 = vld [vmem:[#allocation2 + $0x3c] sm:$0x1] }
 0x149   :  { %698 = vst [vmem:[#allocation2 + $0x28] sm:$0xf] %v697_v48  ;;  %701 = vst [vmem:[#allocation2 + $0x2c] sm:$0x1] %v700_v49  ;;  %v4146_v54 = vpack.c.bf16 %v368_v34, %v368_v34  ;;  %v369_v55 = vmax.f32 %v353_v38, 0.0  ;;  %v841_v57 = vrot.slane %v840_v39, 4 }
 0x14a   :  { %v703_v62 = vsel %vm5125_vm4, %v551_v52, %v702_v25  ;;  %v706_v60 = vsel %vm5132_vm5, %v552_v53, %v705_v37  ;;  %v848_v63 = vshrl.u32 %v5192_v40, 16  ;;  %v851_v0 = vshll.u32 %v5192_v40, 16  ;;  %v4795_v19 = vld [vmem:[#allocation8 + $0x108] sm:$0xff]   ;;  %v5213_v26 = vld [vmem:[#allocation2 + $0x14] sm:$0x1] }
 0x14b   :  { %704 = vst [vmem:[#allocation2 + $0x30] sm:$0xf] %v703_v62  ;;  %707 = vst [vmem:[#allocation2 + $0x34] sm:$0x1] %v706_v60  ;;  %v554_v3 = vshrl.u32 %v4146_v54, 16  ;;  %v4147_v4 = vpack.c.bf16 %v369_v55, %v369_v55  ;;  %v300_v5 = vpop.f32.mrb[16].mxu0  ;;  %v846_v6 = vsel %vm5164_vm8, %v841_v57, %v845_v58 }
 0x14c   :  { %v5208_v7 = vrot.slane %v935_v9, 5  ;;  %v354_v13 = vadd.f32 %v5113_v43, %v300_v5  ;;  %v5211_v14 = vpop.f32.mrb[17].mxu0  ;;  %v3947_v15 = vcombine.low %v832_v8, %v846_v6  ;;  %v4789_v16 = vld [vmem:[#allocation2 + $0x18] ss:$8 sps:$4 sm:$0xff]   ;;  %v850_v17 = vrot.slane %v848_v63, 4  ;;  %v4797_v38 = vld [vmem:[#allocation8 + $0x110] sm:$0xff]  }
 0x14d   :  { %5902 = vst [vmem:[#allocation17_spill] sm:$0xff] %v5211_v14  ;;  %v853_v18 = vrot.slane %v851_v0, 5  ;;  %v556_v20 = vrot.slane %v554_v3, 7  ;;  %v557_v21 = vshll.u32 %v4146_v54, 16  ;;  %v562_v24 = vshrl.u32 %v4147_v4, 16  ;;  %v304_v25 = vpop.f32.mrb[18].mxu0  ;;  %4413 = vmatmul.mubr.bf16.vlgmr.msra.gmra.mrb[0].mxu1 %v4789_v16 }
 0x14e   :  { %v714_v27 = vld [vmem:[#allocation2 + $0x40] sm:$0xf]  ;;  %v370_v9 = vmax.f32 %v354_v13, 0.0  ;;  %4316 = vmatprep.mubr.bf16.mxu0 %v3947_v15  ;;  %v355_v28 = vadd.f32 %v5113_v43, %v304_v25  ;;  %v5216_v29 = vpop.f32.mrb[19].mxu0  ;;  %v5218_v8 = vrot.slane %v941_v47, 5  ;;  %v565_v36 = vshll.u32 %v4147_v4, 16  ;;  %4429 = vmatpush3.bf16.msra.mxu1 %v5104_v41 }
 0x14f   :  { %5903 = vst [vmem:[#allocation18_spill] sm:$0xff] %v5216_v29  ;;  %v854_v30 = vor.u32 %v853_v18, %v850_v17  ;;  %v559_v31 = vor.u32 %v557_v21, %v556_v20  ;;  %v560_v32 = vrot.slane %v556_v20, 4  ;;  %v564_v34 = vrot.slane %v562_v24, 7  ;;  %v717_v37 = vld [vmem:[#allocation2 + $0x44] sm:$0x1]  ;;  %4430 = vmatprep.subr.bf16.mxu1 %v4795_v19  ;;  %v4800_v17 = vld [vmem:[#allocation8 + $0x118] sm:$0xff]  }
 0x150   :  { %v4148_v39 = vpack.c.bf16 %v370_v9, %v370_v9  ;;  %v371_v48 = vmax.f32 %v355_v28, 0.0  ;;  %v5221_v49 = vld [vmem:[#allocation2 + $0x18] sm:$0xf]  ;;  %v857_v52 = vshll.u32 %v5213_v26, 16  ;;  %v803_v57 = vld [vmem:[#allocation2 + $0x1c] sm:$0x1]  ;;  %v938_v63 = vor.u32 %v5208_v7, %v5194_v44 }
 0x151   :  { %v709_v53 = vsel %vm5125_vm4, %v559_v31, %v708_v10  ;;  %v712_v47 = vsel %vm5132_vm5, %v560_v32, %v711_v11  ;;  %v567_v54 = vor.u32 %v565_v36, %v564_v34  ;;  %v568_v55 = vrot.slane %v564_v34, 4  ;;  %v720_v4 = vld [vmem:[#allocation2 + $0x58] sm:$0xf]  ;;  %v723_v5 = vld [vmem:[#allocation2 + $0x5c] sm:$0x1] }
 0x152   :  { %710 = vst [vmem:[#allocation2 + $0x38] sm:$0xf] %v709_v53  ;;  %713 = vst [vmem:[#allocation2 + $0x3c] sm:$0x1] %v712_v47  ;;  %v570_v41 = vshrl.u32 %v4148_v39, 16  ;;  %v4149_v58 = vpack.c.bf16 %v371_v48, %v371_v48  ;;  %v5228_v62 = vrot.slane %v854_v30, 4  ;;  %4431 = vmatpush3.bf16.msra.mxu1 %v4795_v19 }
 0x153   :  { %v4791_v60 = vld [vmem:[#allocation2 + $0x28] ss:$8 sps:$4 sm:$0xff]   ;;  %v715_v0 = vsel %vm5125_vm4, %v567_v54, %v714_v27  ;;  %v718_v3 = vsel %vm5132_vm5, %v568_v55, %v717_v37  ;;  %v310_v6 = vpop.f32.mrb[20].mxu0  ;;  %v862_v10 = vshrl.u32 %v5221_v49, 16  ;;  %v865_v11 = vshll.u32 %v5221_v49, 16  ;;  %4432 = vmatprep.subr.bf16.mxu1 %v4797_v38  ;;  %v4802_v55 = vld [vmem:[#allocation8 + $0x120] sm:$0xff]  }
 0x154   :  { %716 = vst [vmem:[#allocation2 + $0x40] sm:$0xf] %v715_v0  ;;  %719 = vst [vmem:[#allocation2 + $0x44] sm:$0x1] %v718_v3  ;;  %v572_v13 = vrot.slane %v570_v41, 7  ;;  %v573_v15 = vshll.u32 %v4148_v39, 16  ;;  %v356_v44 = vadd.f32 %v5113_v43, %v310_v6  ;;  %4416 = vmatprep.mubr.bf16.mxu1 %v4791_v60 }
 0x155   :  { %v578_v16 = vshrl.u32 %v4149_v58, 16  ;;  %v5239_v7 = vpop.f32.mrb[21].mxu0  ;;  %v581_v18 = vshll.u32 %v4149_v58, 16  ;;  %v864_v20 = vrot.slane %v862_v10, 4  ;;  %v867_v21 = vrot.slane %v865_v11, 5  ;;  %v5260_v6 = vld [vmem:[#allocation8 + $0x8] sm:$0xff]  }
 0x156   :  { %5904 = vst [vmem:[#allocation19_spill] sm:$0xff] %v5239_v7  ;;  %v871_v24 = vshll.u32 %v803_v57, 16  ;;  %v314_v25 = vpop.f32.mrb[22].mxu0  ;;  %v575_v26 = vor.u32 %v573_v15, %v572_v13  ;;  %v576_v27 = vrot.slane %v572_v13, 4  ;;  %v372_v9 = vmax.f32 %v356_v44, 0.0  ;;  %4433 = vmatpush3.bf16.msra.mxu1 %v4797_v38 }
 0x157   :  { %v580_v19 = vrot.slane %v578_v16, 7  ;;  %v5241_v28 = vpop.f32.mrb[23].mxu0  ;;  %v5243_v30 = vld [vmem:[#allocation2 + $0x20] sm:$0xf]  ;;  %v729_v32 = vld [vmem:[#allocation2 + $0x64] sm:$0x1]  ;;  %v868_v36 = vor.u32 %v867_v21, %v864_v20  ;;  %v357_v39 = vadd.f32 %v5113_v43, %v314_v25  ;;  %4434 = vmatprep.subr.bf16.mxu1 %v4800_v17 }
 0x158   :  { %5905 = vst [vmem:[#allocation20_spill] sm:$0xff] %v5241_v28  ;;  %v726_v31 = vld [vmem:[#allocation2 + $0x60] sm:$0xf]  ;;  %v859_v34 = vrot.slane %v857_v52, 5  ;;  %v873_v37 = vrot.slane %v871_v24, 5  ;;  %v721_v48 = vsel %vm5125_vm4, %v575_v26, %v720_v4  ;;  %v724_v53 = vsel %vm5132_vm5, %v576_v27, %v723_v5 }
 0x159   :  { %v583_v47 = vor.u32 %v581_v18, %v580_v19  ;;  %v584_v54 = vrot.slane %v580_v19, 4  ;;  %722 = vst [vmem:[#allocation2 + $0x58] sm:$0xf] %v721_v48  ;;  %725 = vst [vmem:[#allocation2 + $0x5c] sm:$0x1] %v724_v53  ;;  %v4150_v57 = vpack.c.bf16 %v372_v9, %v372_v9  ;;  %v869_v41 = vrot.slane %v868_v36, 4 }
 0x15a   :  { %v373_v52 = vmax.f32 %v357_v39, 0.0  ;;  %v876_v58 = vshrl.u32 %v5243_v30, 16  ;;  %v5255_v0 = vld [vmem:[#allocation2 + $0x28] sm:$0xf]  ;;  %v804_v3 = vld [vmem:[#allocation2 + $0x24] sm:$0x1]  ;;  %v860_v11 = vsel %vm5164_vm8, %v5228_v62, %v859_v34  ;;  %4435 = vmatpush3.bf16.msra.mxu1 %v4800_v17 }
 0x15b   :  { %v727_v38 = vsel %vm5125_vm4, %v583_v47, %v726_v31  ;;  %v730_v60 = vsel %vm5132_vm5, %v584_v54, %v729_v32  ;;  %v879_v4 = vshll.u32 %v5243_v30, 16  ;;  %v5258_v5 = vrot.slane %v938_v63, 4  ;;  %v320_v16 = vpop.f32.mrb[24].mxu0  ;;  %v5267_v44 = vld [vmem:[#allocation2 + $0x2c] sm:$0x1]  ;;  %4436 = vmatprep.subr.bf16.mxu1 %v4802_v55 }
 0x15c   :  { %728 = vst [vmem:[#allocation2 + $0x60] sm:$0xf] %v727_v38  ;;  %731 = vst [vmem:[#allocation2 + $0x64] sm:$0x1] %v730_v60  ;;  %v586_v10 = vshrl.u32 %v4150_v57, 16  ;;  %v874_v13 = vsel %vm5164_vm8, %v869_v41, %v873_v37  ;;  %v4151_v15 = vpack.c.bf16 %v373_v52, %v373_v52  ;;  %v358_v21 = vadd.f32 %v5113_v43, %v320_v16  ;;  %v5270_v24 = vpop.f32.mrb[25].mxu0 }
 0x15d   :  { %v732_v18 = vld [vmem:[#allocation2 + $0x68] sm:$0xf]  ;;  %v735_v63 = vld [vmem:[#allocation2 + $0x6c] sm:$0x1]  ;;  %v3948_v20 = vcombine.low %v860_v11, %v874_v13  ;;  %5906 = vst [vmem:[#allocation21_spill] sm:$0xff] %v5270_v24  ;;  %v878_v25 = vrot.slane %v876_v58, 4 }
 0x15e   :  { %v881_v26 = vrot.slane %v879_v4, 5  ;;  %v4792_v27 = vld [vmem:[#allocation2 + $0x38] ss:$8 sps:$4 sm:$0xff]   ;;  %v4805_v62 = vld [vmem:[#allocation8 + $0x128] sm:$0xff]   ;;  %v588_v19 = vrot.slane %v586_v10, 7  ;;  %v589_v9 = vshll.u32 %v4150_v57, 16  ;;  %4437 = vmatpush3.bf16.msra.mxu1 %v4802_v55 }
 0x15f   :  { %v594_v31 = vshrl.u32 %v4151_v15, 16  ;;  %v885_v32 = vshll.u32 %v804_v3, 16  ;;  %v324_v34 = vpop.f32.mrb[26].mxu0  ;;  %4317 = vmatmul.mubr.bf16.vlgmr.msra.gmra.mrb[32].mxu0 %v3948_v20  ;;  %v597_v36 = vshll.u32 %v4151_v15, 16  ;;  %v738_v17 = vld [vmem:[#allocation2 + $0x70] sm:$0xf]  ;;  %4417 = vmatmul.mubr.bf16.gmra.mrb[4].mxu1 %v4792_v27 }
 0x160   :  { %v374_v37 = vmax.f32 %v358_v21, 0.0  ;;  %v882_v39 = vor.u32 %v881_v26, %v878_v25  ;;  %v890_v48 = vshrl.u32 %v5255_v0, 16  ;;  %v5273_v53 = vpop.f32.mrb[27].mxu0  ;;  %v591_v47 = vor.u32 %v589_v9, %v588_v19  ;;  %v741_v52 = vld [vmem:[#allocation2 + $0x74] sm:$0x1]  ;;  %4333 = vmatpush3.bf16.msra.mxu0 %v5107_v42  ;;  %4438 = vmatprep.subr.bf16.mxu1 %v4805_v62 }
 0x161   :  { %5907 = vst [vmem:[#allocation22_spill] sm:$0xff] %v5273_v53  ;;  %v592_v54 = vrot.slane %v588_v19, 4  ;;  %v596_v41 = vrot.slane %v594_v31, 7  ;;  %v893_v58 = vshll.u32 %v5255_v0, 16  ;;  %v4801_v57 = vld [vmem:[#allocation8 + $0x10] sm:$0xff]   ;;  %v899_v4 = vshll.u32 %v5267_v44, 16  ;;  %4334 = vmatprep.subr.bf16.mxu0 %v5260_v6 }
 0x162   :  { %v4152_v38 = vpack.c.bf16 %v374_v37, %v374_v37  ;;  %v5277_v60 = vrot.slane %v882_v39, 4  ;;  %v892_v3 = vrot.slane %v890_v48, 4  ;;  %v4807_v10 = vld [vmem:[#allocation8 + $0x130] sm:$0xff]   ;;  %v733_v11 = vsel %vm5125_vm4, %v591_v47, %v732_v18  ;;  %v744_v26 = vld [vmem:[#allocation2 + $0x78] sm:$0xf]  ;;  %4439 = vmatpush3.bf16.msra.mxu1 %v4805_v62 }
 0x163   :  { %v736_v13 = vsel %vm5132_vm5, %v592_v54, %v735_v63  ;;  %v599_v15 = vor.u32 %v597_v36, %v596_v41  ;;  %v600_v42 = vrot.slane %v596_v41, 4  ;;  %v5285_v16 = vld [vmem:[#allocation2 + $0x30] sm:$0xf]  ;;  %734 = vst [vmem:[#allocation2 + $0x68] sm:$0xf] %v733_v11  ;;  %v887_v20 = vrot.slane %v885_v32, 5  ;;  %4440 = vmatprep.subr.bf16.mxu1 %v4807_v10 }
 0x164   :  { %737 = vst [vmem:[#allocation2 + $0x6c] sm:$0x1] %v736_v13  ;;  %v602_v55 = vshrl.u32 %v4152_v38, 16  ;;  %v895_v21 = vrot.slane %v893_v58, 5  ;;  %v605_v25 = vshll.u32 %v4152_v38, 16  ;;  %v359_v19 = vadd.f32 %v5113_v43, %v324_v34  ;;  %v330_v9 = vpop.f32.mrb[28].mxu0  ;;  %4335 = vmatpush3.bf16.msra.mxu0 %v5260_v6 }
 0x165   :  { %v739_v18 = vsel %vm5125_vm4, %v599_v15, %v738_v17  ;;  %v742_v63 = vsel %vm5132_vm5, %v600_v42, %v741_v52  ;;  %v747_v27 = vld [vmem:[#allocation2 + $0x7c] sm:$0x1]  ;;  %v4794_v31 = vld [vmem:[#allocation2 + $0x58] ss:$8 sps:$4 sm:$0xff]   ;;  %v888_v36 = vsel %vm5164_vm8, %v5277_v60, %v887_v20  ;;  %v360_v37 = vadd.f32 %v5113_v43, %v330_v9  ;;  %v5301_v39 = vpop.f32.mrb[29].mxu0  ;;  %4336 = vmatprep.subr.bf16.mxu0 %v4801_v57 }
 0x166   :  { %740 = vst [vmem:[#allocation2 + $0x70] sm:$0xf] %v739_v18  ;;  %743 = vst [vmem:[#allocation2 + $0x74] sm:$0x1] %v742_v63  ;;  %v604_v32 = vrot.slane %v602_v55, 7  ;;  %v896_v17 = vor.u32 %v895_v21, %v892_v3  ;;  %v4804_v34 = vld [vmem:[#allocation8 + $0x18] sm:$0xff]   ;;  %4420 = vmatprep.mubr.bf16.mxu1 %v4794_v31  ;;  %4441 = vmatpush3.bf16.msra.mxu1 %v4807_v10 }
 0x167   :  { %5908 = vst [vmem:[#allocation23_spill] sm:$0xff] %v5301_v39  ;;  %v806_v48 = vld [vmem:[#allocation2 + $0x34] sm:$0x1]  ;;  %v901_v47 = vrot.slane %v899_v4, 5  ;;  %v375_v54 = vmax.f32 %v359_v19, 0.0  ;;  %v904_v6 = vshrl.u32 %v5285_v16, 16 }
 0x168   :  { %v907_v62 = vshll.u32 %v5285_v16, 16  ;;  %v334_v41 = vpop.f32.mrb[30].mxu0  ;;  %v4810_v52 = vld [vmem:[#allocation8 + $0x138] sm:$0xff]   ;;  %v607_v58 = vor.u32 %v605_v25, %v604_v32  ;;  %v608_v38 = vrot.slane %v604_v32, 4  ;;  %v897_v60 = vrot.slane %v896_v17, 4  ;;  %4337 = vmatpush3.bf16.msra.mxu0 %v4801_v57  ;;  %v4806_v9 = vld [vmem:[#allocation8 + $0x20] sm:$0xff]  }
 0x169   :  { %v376_v3 = vmax.f32 %v360_v37, 0.0  ;;  %v5305_v11 = vpop.f32.mrb[31].mxu0  ;;  %v5307_v13 = vld [vmem:[#allocation2] sm:$0xe]  ;;  %v4153_v15 = vpack.c.bf16 %v375_v54, %v375_v54  ;;  %v5309_v42 = vld [vmem:[#allocation2 + $0x38] sm:$0xf]  ;;  %4338 = vmatprep.subr.bf16.mxu0 %v4804_v34  ;;  %4442 = vmatprep.subr.bf16.mxu1 %v4810_v52 }
 0x16a   :  { %5909 = vst [vmem:[#allocation24_spill] sm:$0xff] %v5305_v11  ;;  %v906_v4 = vrot.slane %v904_v6, 4  ;;  %v909_v55 = vrot.slane %v907_v62, 5  ;;  %v913_v20 = vshll.u32 %v806_v48, 16  ;;  %v745_v21 = vsel %vm5125_vm4, %v607_v58, %v744_v26  ;;  %v807_v19 = vld [vmem:[#allocation2 + $0x3c] sm:$0x1]  ;;  %4443 = vmatpush3.bf16.msra.mxu1 %v4810_v52 }
 0x16b   :  { %v748_v18 = vsel %vm5132_vm5, %v608_v38, %v747_v27  ;;  %v902_v63 = vsel %vm5164_vm8, %v897_v60, %v901_v47  ;;  %v4154_v25 = vpack.c.bf16 %v376_v3, %v376_v3  ;;  %746 = vst [vmem:[#allocation2 + $0x78] sm:$0xf] %v745_v21  ;;  %v610_v32 = vshrl.u32 %v4153_v15, 16  ;;  %v5317_v57 = vld [vmem:[#allocation8 + $0x140] sm:$0xff]   ;;  %v5321_v54 = vld [vmem:[#allocation2 + $0x58] sm:$0xf] }
 0x16c   :  { %749 = vst [vmem:[#allocation2 + $0x7c] sm:$0x1] %v748_v18  ;;  %v3949_v31 = vcombine.low %v888_v36, %v902_v63  ;;  %v910_v17 = vor.u32 %v909_v55, %v906_v4  ;;  %v613_v26 = vshll.u32 %v4153_v15, 16  ;;  %v750_v37 = vld [vmem:[#allocation2 + $0x80] sm:$0xf]  ;;  %v918_v47 = vshrl.u32 %v5309_v42, 16  ;;  %4339 = vmatpush3.bf16.msra.mxu0 %v4804_v34  ;;  %4460 = vmatprep.subr.bf16.mxu1 %v5317_v57 }
 0x16d   :  { %v753_v27 = vld [vmem:[#allocation2 + $0x84] sm:$0x1]  ;;  %v618_v48 = vshrl.u32 %v4154_v25, 16  ;;  %v612_v62 = vrot.slane %v610_v32, 7  ;;  %v621_v36 = vshll.u32 %v4154_v25, 16  ;;  %v921_v60 = vshll.u32 %v5309_v42, 16  ;;  %4340 = vmatprep.subr.bf16.mxu0 %v4806_v9 }
 0x16e   :  { %4320 = vmatprep.mubr.bf16.mxu0 %v3949_v31  ;;  %v756_v58 = vld [vmem:[#allocation2 + $0x88] sm:$0xf]  ;;  %v759_v38 = vld [vmem:[#allocation2 + $0x8c] sm:$0x1]  ;;  %v927_v3 = vshll.u32 %v807_v19, 16  ;;  %v915_v15 = vrot.slane %v913_v20, 5  ;;  %v361_v21 = vadd.f32 %v5113_v43, %v334_v41 }
 0x16f   :  { %v620_v4 = vrot.slane %v618_v48, 7  ;;  %v920_v55 = vrot.slane %v918_v47, 4  ;;  %v4798_v18 = vld [vmem:[#allocation2 + $0x68] ss:$8 sps:$4 sm:$0xff]   ;;  %v615_v10 = vor.u32 %v613_v26, %v612_v62  ;;  %v616_v6 = vrot.slane %v612_v62, 4 }
 0x170   :  { %v4809_v63 = vld [vmem:[#allocation8 + $0x28] sm:$0xff]   ;;  %v911_v31 = vrot.slane %v910_v17, 4  ;;  %v923_v32 = vrot.slane %v921_v60, 5  ;;  %v5326_v25 = vld [vmem:[#allocation2 + $0x5c] sm:$0x1]  ;;  %v929_v34 = vrot.slane %v927_v3, 5  ;;  %4421 = vmatmul.mubr.bf16.gmra.mrb[8].mxu1 %v4798_v18  ;;  %4341 = vmatpush3.bf16.msra.mxu0 %v4806_v9 }
 0x171   :  { %v623_v44 = vor.u32 %v621_v36, %v620_v4  ;;  %v624_v19 = vrot.slane %v620_v4, 4  ;;  %v377_v48 = vmax.f32 %v361_v21, 0.0  ;;  %v5329_v20 = vld [vmem:[#allocation2 + $0x60] sm:$0xf]  ;;  %v751_v43 = vsel %vm5125_vm4, %v615_v10, %v750_v37  ;;  %v810_v60 = vld [vmem:[#allocation2 + $0x64] sm:$0x1]  ;;  %4342 = vmatprep.subr.bf16.mxu0 %v4809_v63 }
 0x172   :  { %v754_v41 = vsel %vm5132_vm5, %v616_v6, %v753_v27  ;;  %v924_v52 = vor.u32 %v923_v32, %v920_v55  ;;  %v946_v17 = vshrl.u32 %v5321_v54, 16  ;;  %752 = vst [vmem:[#allocation2 + $0x80] sm:$0xf] %v751_v43  ;;  %v949_v36 = vshll.u32 %v5321_v54, 16  ;;  %v4811_v10 = vld [vmem:[#allocation8 + $0x30] sm:$0xff]  }
 0x173   :  { %755 = vst [vmem:[#allocation2 + $0x84] sm:$0x1] %v754_v41  ;;  %v757_v26 = vsel %vm5125_vm4, %v623_v44, %v756_v58  ;;  %v760_v47 = vsel %vm5132_vm5, %v624_v19, %v759_v38  ;;  %v4155_v62 = vpack.c.bf16 %v377_v48, %v377_v48  ;;  %v955_v9 = vshll.u32 %v5326_v25, 16  ;;  %v5342_v6 = vld [vmem:[#allocation2 + $0x68] sm:$0xf] }
 0x174   :  { %758 = vst [vmem:[#allocation2 + $0x88] sm:$0xf] %v757_v26  ;;  %761 = vst [vmem:[#allocation2 + $0x8c] sm:$0x1] %v760_v47  ;;  %v925_v37 = vrot.slane %v924_v52, 4  ;;  %v948_v27 = vrot.slane %v946_v17, 4  ;;  %v916_v44 = vsel %vm5164_vm8, %v911_v31, %v915_v15  ;;  %4343 = vmatpush3.bf16.msra.mxu0 %v4809_v63 }
 0x175   :  { %v960_v3 = vshrl.u32 %v5329_v20, 16  ;;  %v626_v58 = vshrl.u32 %v4155_v62, 16  ;;  %v951_v38 = vrot.slane %v949_v36, 5  ;;  %v5347_v4 = vld [vmem:[#allocation2 + $0x6c] sm:$0x1]  ;;  %v963_v55 = vshll.u32 %v5329_v20, 16  ;;  %4344 = vmatprep.subr.bf16.mxu0 %v4811_v10 }
 0x176   :  { %v930_v21 = vsel %vm5164_vm8, %v925_v37, %v929_v34  ;;  %v629_v18 = vshll.u32 %v4155_v62, 16  ;;  %v762_v32 = vld [vmem:[#allocation2 + $0x90] sm:$0xf]  ;;  %v765_v19 = vld [vmem:[#allocation2 + $0x94] sm:$0x1]  ;;  %v969_v43 = vshll.u32 %v810_v60, 16 }
 0x177   :  { %v962_v48 = vrot.slane %v960_v3, 4  ;;  %v3950_v41 = vcombine.low %v916_v44, %v930_v21  ;;  %v628_v52 = vrot.slane %v626_v58, 7  ;;  %v952_v17 = vor.u32 %v951_v38, %v948_v27  ;;  %v5352_v15 = vld [vmem:[#allocation2 + $0x70] sm:$0xf]  ;;  %v4814_v31 = vld [vmem:[#allocation8 + $0x38] sm:$0xff]  }
 0x178   :  { %v965_v26 = vrot.slane %v963_v55, 5  ;;  %v957_v47 = vrot.slane %v955_v9, 5  ;;  %v974_v36 = vshrl.u32 %v5342_v6, 16  ;;  %v977_v53 = vshll.u32 %v5342_v6, 16  ;;  %v5357_v62 = vld [vmem:[#allocation2 + $0x74] sm:$0x1]  ;;  %4345 = vmatpush3.bf16.msra.mxu0 %v4811_v10 }
 0x179   :  { %v983_v34 = vshll.u32 %v5347_v4, 16  ;;  %4321 = vmatmul.mubr.bf16.gmra.mrb[36].mxu0 %v3950_v41  ;;  %v631_v60 = vor.u32 %v629_v18, %v628_v52  ;;  %v632_v63 = vrot.slane %v628_v52, 4  ;;  %v953_v37 = vrot.slane %v952_v17, 4  ;;  %v5359_v27 = vld [vmem:[#allocation2 + $0x78] sm:$0xf]  ;;  %4346 = vmatprep.subr.bf16.mxu0 %v4814_v31  ;;  %v5370_v17 = vld [vmem:[#allocation8 + $0x80] sm:$0xff]  }
 0x17a   :  { %v966_v3 = vor.u32 %v965_v26, %v962_v48  ;;  %v5361_v44 = vld [vmem:[#allocation2 + $0x7c] sm:$0x1]  ;;  %v1997_v58 = vld [vmem:[#allocation2 + $0x8] sm:$0xf]  ;;  %v971_v38 = vrot.slane %v969_v43, 5  ;;  %v976_v9 = vrot.slane %v974_v36, 4 }
 0x17b   :  { %v979_v55 = vrot.slane %v977_v53, 5  ;;  %v988_v21 = vshrl.u32 %v5352_v15, 16  ;;  %v763_v11 = vsel %vm5125_vm4, %v631_v60, %v762_v32  ;;  %v766_v18 = vsel %vm5132_vm5, %v632_v63, %v765_v19  ;;  %v4803_v52 = vld [vmem:[#allocation2 + $0x78] ss:$8 sps:$4 sm:$0xff]   ;;  %v5421_v29 = vld [vmem:[#allocation2 + $0x24] sm:$0x1] }
 0x17c   :  { %v958_v48 = vsel %vm5164_vm8, %v953_v37, %v957_v47  ;;  %v967_v41 = vrot.slane %v966_v3, 4  ;;  %764 = vst [vmem:[#allocation2 + $0x90] sm:$0xf] %v763_v11  ;;  %767 = vst [vmem:[#allocation2 + $0x94] sm:$0x1] %v766_v18  ;;  %v5910_v53 = vsel %vm5164_vm8, %v5258_v5, %v5218_v8  ;;  %v991_v2 = vshll.u32 %v5352_v15, 16  ;;  %4424 = vmatprep.mubr.bf16.mxu1 %v4803_v52 }
 0x17d   :  { %v3951_v61 = vcombine.low %v5910_v53, %v958_v48  ;;  %v980_v10 = vor.u32 %v979_v55, %v976_v9  ;;  %v990_v32 = vrot.slane %v988_v21, 4  ;;  %v985_v19 = vrot.slane %v983_v34, 5  ;;  %4347 = vmatpush3.bf16.msra.mxu0 %v4814_v31  ;;  %v1999_v37 = vld [vmem:[#allocation2 + $0x10] sm:$0xf]  ;;  %v5389_v18 = vld [vmem:[#allocation2 + $0xc] sm:$0x1] }
 0x17e   :  { %v997_v43 = vshll.u32 %v5357_v62, 16  ;;  %v1002_v26 = vshrl.u32 %v5359_v27, 16  ;;  %v1005_v47 = vshll.u32 %v5359_v27, 16  ;;  %v993_v36 = vrot.slane %v991_v2, 5  ;;  %4364 = vmatprep.subr.bf16.mxu0 %v5370_v17  ;;  %v5391_v48 = vld [vmem:[#allocation2 + $0x14] sm:$0x1] }
 0x17f   :  { %4324 = vmatprep.mubr.bf16.mxu0 %v3951_v61  ;;  %v981_v11 = vrot.slane %v980_v10, 4  ;;  %v1011_v60 = vshll.u32 %v5361_v44, 16  ;;  %v2030_v63 = vshrl.u32 %v1997_v58, 16  ;;  %v2033_v3 = vshll.u32 %v1997_v58, 16  ;;  %v5393_v10 = vld [vmem:[#allocation2 + $0x80] sm:$0xf] }
 0x180   :  { %v1004_v8 = vrot.slane %v1002_v26, 4  ;;  %v1007_v5 = vrot.slane %v1005_v47, 5  ;;  %v972_v9 = vsel %vm5164_vm8, %v967_v41, %v971_v38  ;;  %v994_v21 = vor.u32 %v993_v36, %v990_v32  ;;  %v5395_v2 = vld [vmem:[#allocation2 + $0x88] sm:$0xf]  ;;  %v5397_v34 = vld [vmem:[#allocation2 + $0x84] sm:$0x1] }
 0x181   :  { %v986_v55 = vsel %vm5164_vm8, %v981_v11, %v985_v19  ;;  %v2032_v31 = vrot.slane %v2030_v63, 4  ;;  %v999_v53 = vrot.slane %v997_v43, 5  ;;  %v2035_v61 = vrot.slane %v2033_v3, 5  ;;  %v2007_v45 = vld [vmem:[#allocation2 + $0x30] sm:$0xf] }
 0x182   :  { %v3952_v52 = vcombine.low %v972_v9, %v986_v55  ;;  %v1008_v58 = vor.u32 %v1007_v5, %v1004_v8  ;;  %v995_v26 = vrot.slane %v994_v21, 4  ;;  %v1013_v47 = vrot.slane %v1011_v60, 5  ;;  %v5407_v9 = vld [vmem:[#allocation2 + $0x8c] sm:$0x1]  ;;  %v5434_v33 = vld [vmem:[#allocation2 + $0x3c] sm:$0x1] }
 0x183   :  { %v2044_v38 = vshrl.u32 %v1999_v37, 16  ;;  %v2047_v41 = vshll.u32 %v1999_v37, 16  ;;  %v4808_v19 = vld [vmem:[#allocation2 + $0x88] ss:$8 sps:$4 sm:$0xff]   ;;  %v2036_v11 = vor.u32 %v2035_v61, %v2032_v31  ;;  %v2039_v36 = vshll.u32 %v5389_v18, 16 }
 0x184   :  { %4325 = vmatmul.mubr.bf16.gmra.mrb[40].mxu0 %v3952_v52  ;;  %v1009_v32 = vrot.slane %v1008_v58, 4  ;;  %v1000_v63 = vsel %vm5164_vm8, %v995_v26, %v999_v53  ;;  %v2053_v60 = vshll.u32 %v5391_v48, 16  ;;  %4425 = vmatmul.mubr.bf16.gmra.mrb[12].mxu1 %v4808_v19  ;;  %v1016_v55 = vshrl.u32 %v5393_v10, 16  ;;  %v2001_v61 = vld [vmem:[#allocation2 + $0x18] sm:$0xf] }
 0x185   :  { %v2046_v8 = vrot.slane %v2044_v38, 4  ;;  %v2049_v5 = vrot.slane %v2047_v41, 5  ;;  %v2037_v3 = vrot.slane %v2036_v11, 4  ;;  %v1019_v21 = vshll.u32 %v5393_v10, 16  ;;  %v2011_v23 = vld [vmem:[#allocation2 + $0x40] sm:$0xf] }
 0x186   :  { %v1014_v37 = vsel %vm5164_vm8, %v1009_v32, %v1013_v47  ;;  %v1025_v58 = vshll.u32 %v5397_v34, 16  ;;  %v1030_v53 = vshrl.u32 %v5395_v2, 16  ;;  %v2041_v26 = vrot.slane %v2039_v36, 5  ;;  %v2003_v32 = vld [vmem:[#allocation2 + $0x20] sm:$0xf] }
 0x187   :  { %v3953_v31 = vcombine.low %v1000_v63, %v1014_v37  ;;  %v2050_v52 = vor.u32 %v2049_v5, %v2046_v8  ;;  %v1018_v38 = vrot.slane %v1016_v55, 4  ;;  %v1021_v41 = vrot.slane %v1019_v21, 5  ;;  %v5415_v8 = vld [vmem:[#allocation2 + $0x1c] sm:$0x1]  ;;  %v3506_v56 = vld [vmem:[#allocation2 + $0x80] sm:$0xe] }
 0x188   :  { %v1033_v47 = vshll.u32 %v5395_v2, 16  ;;  %v2055_v11 = vrot.slane %v2053_v60, 5  ;;  %v1032_v43 = vrot.slane %v1030_v53, 4  ;;  %v1039_v24 = vshll.u32 %v5407_v9, 16  ;;  %v2005_v60 = vld [vmem:[#allocation2 + $0x28] sm:$0xf] }
 0x189   :  { %4328 = vmatprep.mubr.bf16.mxu0 %v3953_v31  ;;  %v2051_v19 = vrot.slane %v2050_v52, 4  ;;  %v1022_v39 = vor.u32 %v1021_v41, %v1018_v38  ;;  %v2058_v5 = vshrl.u32 %v2001_v61, 16  ;;  %v2061_v37 = vshll.u32 %v2001_v61, 16  ;;  %v5423_v41 = vld [vmem:[#allocation2 + $0x2c] sm:$0x1] }
 0x18a   :  { %v1035_v63 = vrot.slane %v1033_v47, 5  ;;  %v2042_v36 = vsel %vm5164_vm8, %v2037_v3, %v2041_v26  ;;  %v1027_v21 = vrot.slane %v1025_v58, 5  ;;  %v2072_v31 = vshrl.u32 %v2003_v32, 16 }
 0x18b   :  { %v2056_v55 = vsel %vm5164_vm8, %v2051_v19, %v2055_v11  ;;  %v1023_v53 = vrot.slane %v1022_v39, 4  ;;  %v2060_v38 = vrot.slane %v2058_v5, 4  ;;  %v1041_v47 = vrot.slane %v1039_v24, 5 }
 0x18c   :  { %v4027_v52 = vcombine.low %v2042_v36, %v2056_v55  ;;  %v1036_v28 = vor.u32 %v1035_v63, %v1032_v43  ;;  %v2063_v14 = vrot.slane %v2061_v37, 5  ;;  %v2074_v61 = vrot.slane %v2072_v31, 4 }
 0x18d   :  { %v2075_v7 = vshll.u32 %v2003_v32, 16  ;;  %v2067_v26 = vshll.u32 %v5415_v8, 16  ;;  %v2081_v58 = vshll.u32 %v5421_v29, 16  ;;  %v2086_v19 = vshrl.u32 %v2005_v60, 16  ;;  %v5432_v32 = vld [vmem:[#allocation2 + $0x34] sm:$0x1] }
 0x18e   :  { %4444 = vmatprep.mubr.bf16.mxu1 %v4027_v52  ;;  %v1037_v3 = vrot.slane %v1036_v28, 4  ;;  %v2064_v11 = vor.u32 %v2063_v14, %v2060_v38  ;;  %v2089_v36 = vshll.u32 %v2005_v60, 16  ;;  %v2095_v39 = vshll.u32 %v5423_v41, 16  ;;  %v2009_v52 = vld [vmem:[#allocation2 + $0x38] sm:$0xf] }
 0x18f   :  { %v2077_v35 = vrot.slane %v2075_v7, 5  ;;  %v1028_v43 = vsel %vm5164_vm8, %v1023_v53, %v1027_v21  ;;  %v2088_v63 = vrot.slane %v2086_v19, 4  ;;  %v2100_v28 = vshrl.u32 %v2007_v45, 16 }
 0x190   :  { %v1042_v24 = vsel %vm5164_vm8, %v1037_v3, %v1041_v47  ;;  %v2065_v37 = vrot.slane %v2064_v11, 4  ;;  %v2091_v31 = vrot.slane %v2089_v36, 5  ;;  %v2069_v14 = vrot.slane %v2067_v26, 5  ;;  %v4815_v26 = vld [vmem:[#allocation8 + $0x148] sm:$0xff]  }
 0x191   :  { %v3954_v5 = vcombine.low %v1028_v43, %v1042_v24  ;;  %v2078_v55 = vor.u32 %v2077_v35, %v2074_v61  ;;  %v2083_v7 = vrot.slane %v2081_v58, 5  ;;  %v2102_v60 = vrot.slane %v2100_v28, 4  ;;  %v5446_v43 = vld [vmem:[#allocation2 + $0x44] sm:$0x1] }
 0x192   :  { %v2103_v38 = vshll.u32 %v2007_v45, 16  ;;  %v2092_v53 = vor.u32 %v2091_v31, %v2088_v63  ;;  %v2097_v47 = vrot.slane %v2095_v39, 5  ;;  %v2109_v3 = vshll.u32 %v5432_v32, 16  ;;  %v2013_v63 = vld [vmem:[#allocation2 + $0x58] sm:$0xf] }
 0x193   :  { %4329 = vmatmul.mubr.bf16.gmra.mrb[44].mxu0 %v3954_v5  ;;  %v2079_v21 = vrot.slane %v2078_v55, 4  ;;  %v5911_v19 = vcombine.low %v5121_v51, %v5168_v59  ;;  %v2070_v35 = vsel %vm5164_vm8, %v2065_v37, %v2069_v14  ;;  %v2114_v58 = vshrl.u32 %v2009_v52, 16  ;;  %v5448_v37 = vld [vmem:[#allocation2 + $0x5c] sm:$0x1]  ;;  %v2015_v55 = vld [vmem:[#allocation2 + $0x60] sm:$0xf] }
 0x194   :  { %v2105_v61 = vrot.slane %v2103_v38, 5  ;;  %v2117_v45 = vshll.u32 %v2009_v52, 16  ;;  %v2093_v36 = vrot.slane %v2092_v53, 4  ;;  %v3965_v39 = vcombine.low %v5243_v30, %v5255_v0 }
 0x195   :  { %4348 = vmatprep.mubr.bf16.mxu0 %v5911_v19  ;;  %v2084_v11 = vsel %vm5164_vm8, %v2079_v21, %v2083_v7  ;;  %v2128_v24 = vshrl.u32 %v2011_v23, 16  ;;  %v2116_v28 = vrot.slane %v2114_v58, 4  ;;  %v2111_v31 = vrot.slane %v2109_v3, 5 }
 0x196   :  { %v4028_v51 = vcombine.low %v2070_v35, %v2084_v11  ;;  %v2106_v59 = vor.u32 %v2105_v61, %v2102_v60  ;;  %v2119_v5 = vrot.slane %v2117_v45, 5  ;;  %v2123_v52 = vshll.u32 %v5434_v33, 16  ;;  %v5458_v45 = vld [vmem:[#allocation2 + $0x64] sm:$0x1] }
 0x197   :  { %v2130_v14 = vrot.slane %v2128_v24, 4  ;;  %v2131_v7 = vshll.u32 %v2011_v23, 16  ;;  %v2137_v30 = vshll.u32 %v5446_v43, 16  ;;  %v2142_v0 = vshrl.u32 %v2013_v63, 16  ;;  %v4818_v23 = vld [vmem:[#allocation8 + $0x150] sm:$0xff]   ;;  %v4820_v24 = vld [vmem:[#allocation8 + $0x88] sm:$0xff]  }
 0x198   :  { %4445 = vmatmul.mubr.bf16.vlgmr.msra.gmra.mrb[0].mxu1 %v4028_v51  ;;  %v2107_v38 = vrot.slane %v2106_v59, 4  ;;  %v2120_v21 = vor.u32 %v2119_v5, %v2116_v28  ;;  %v2145_v60 = vshll.u32 %v2013_v63, 16  ;;  %v2151_v19 = vshll.u32 %v5448_v37, 16  ;;  %v4823_v5 = vld [vmem:[#allocation8 + $0x90] sm:$0xff]  }
 0x199   :  { %4461 = vmatpush3.bf16.msra.mxu1 %v5317_v57  ;;  %v2133_v53 = vrot.slane %v2131_v7, 5  ;;  %v2156_v35 = vshrl.u32 %v2015_v55, 16  ;;  %v2098_v3 = vsel %vm5164_vm8, %v2093_v36, %v2097_v47  ;;  %v2144_v11 = vrot.slane %v2142_v0, 4  ;;  %v2017_v47 = vld [vmem:[#allocation2 + $0x68] sm:$0xf] }
 0x19a   :  { %v2112_v61 = vsel %vm5164_vm8, %v2107_v38, %v2111_v31  ;;  %4462 = vmatprep.subr.bf16.mxu1 %v4815_v26  ;;  %v2121_v58 = vrot.slane %v2120_v21, 4  ;;  %v5912_v57 = vcombine.low %v5192_v40, %v5221_v49  ;;  %v2125_v63 = vrot.slane %v2123_v52, 5  ;;  %v2019_v21 = vld [vmem:[#allocation2 + $0x70] sm:$0xf] }
 0x19b   :  { %v4029_v51 = vcombine.low %v2098_v3, %v2112_v61  ;;  %v2134_v59 = vor.u32 %v2133_v53, %v2130_v14  ;;  %v2147_v28 = vrot.slane %v2145_v60, 5  ;;  %v2139_v36 = vrot.slane %v2137_v30, 5  ;;  %v5469_v30 = vld [vmem:[#allocation2 + $0x6c] sm:$0x1]  ;;  %v5474_v3 = vld [vmem:[#allocation2 + $0x74] sm:$0x1] }
 0x19c   :  { %4349 = vmatmul.mubr.bf16.vlgmr.msra.gmra.mrb[32].mxu0 %v5912_v57  ;;  %v2153_v31 = vrot.slane %v2151_v19, 5  ;;  %v2158_v7 = vrot.slane %v2156_v35, 4  ;;  %v2159_v38 = vshll.u32 %v2015_v55, 16  ;;  %v2126_v0 = vsel %vm5164_vm8, %v2121_v58, %v2125_v63  ;;  %v4869_v19 = vld [vmem:[#allocation2 + $0x50] sm:$0xf] }
 0x19d   :  { %4352 = vmatprep.mubr.bf16.mxu0 %v3965_v39  ;;  %4365 = vmatpush3.bf16.msra.mxu0 %v5370_v17  ;;  %v2135_v40 = vrot.slane %v2134_v59, 4  ;;  %v2148_v49 = vor.u32 %v2147_v28, %v2144_v11  ;;  %v2165_v52 = vshll.u32 %v5458_v45, 16  ;;  %v4821_v39 = vld [vmem:[#allocation8 + $0x158] sm:$0xff]   ;;  %v3966_v17 = vcombine.low %v5285_v16, %v5309_v42  ;;  %v2023_v63 = vld [vmem:[#allocation2 + $0x80] sm:$0xf] }
 0x19e   :  { %4448 = vmatprep.mubr.bf16.mxu1 %v4029_v51  ;;  %4463 = vmatpush3.bf16.msra.mxu1 %v4815_v26  ;;  %v2161_v14 = vrot.slane %v2159_v38, 5  ;;  %v2170_v55 = vshrl.u32 %v2017_v47, 16  ;;  %v2173_v53 = vshll.u32 %v2017_v47, 16  ;;  %v3967_v35 = vcombine.low %v4869_v19, %v5321_v54  ;;  %v2021_v58 = vld [vmem:[#allocation2 + $0x78] sm:$0xf] }
 0x19f   :  { %4464 = vmatprep.subr.bf16.mxu1 %v4818_v23  ;;  %4366 = vmatprep.subr.bf16.mxu0 %v4820_v24  ;;  %v2140_v26 = vsel %vm5164_vm8, %v2135_v40, %v2139_v36  ;;  %v2149_v60 = vrot.slane %v2148_v49, 4  ;;  %v2184_v61 = vshrl.u32 %v2019_v21, 16  ;;  %v5476_v42 = vld [vmem:[#allocation2 + $0x7c] sm:$0x1]  ;;  %v2167_v59 = vrot.slane %v2165_v52, 5 }
 0x1a0   :  { %v4030_v11 = vcombine.low %v2126_v0, %v2140_v26  ;;  %v2162_v51 = vor.u32 %v2161_v14, %v2158_v7  ;;  %v2172_v57 = vrot.slane %v2170_v55, 4  ;;  %v2175_v16 = vrot.slane %v2173_v53, 5  ;;  %v4826_v54 = vld [vmem:[#allocation8 + $0x98] sm:$0xff]   ;;  %v4824_v7 = vld [vmem:[#allocation8 + $0x160] sm:$0xff]  }
 0x1a1   :  { %4367 = vmatpush3.bf16.msra.mxu0 %v4820_v24  ;;  %v2179_v28 = vshll.u32 %v5469_v30, 16  ;;  %v2186_v47 = vrot.slane %v2184_v61, 4  ;;  %v2187_v36 = vshll.u32 %v2019_v21, 16  ;;  %v2193_v0 = vshll.u32 %v5474_v3, 16  ;;  %v5485_v26 = vld [vmem:[#allocation2 + $0x84] sm:$0x1] }
 0x1a2   :  { %4465 = vmatpush3.bf16.msra.mxu1 %v4818_v23  ;;  %4368 = vmatprep.subr.bf16.mxu0 %v4823_v5  ;;  %v2163_v38 = vrot.slane %v2162_v51, 4  ;;  %v2176_v24 = vor.u32 %v2175_v16, %v2172_v57  ;;  %v2198_v40 = vshrl.u32 %v2021_v58, 16  ;;  %v2201_v23 = vshll.u32 %v2021_v58, 16  ;;  %v4827_v51 = vld [vmem:[#allocation8 + $0x168] sm:$0xff]   ;;  %v4829_v57 = vld [vmem:[#allocation8 + $0xa0] sm:$0xff]  }
 0x1a3   :  { %4449 = vmatmul.mubr.bf16.gmra.mrb[4].mxu1 %v4030_v11  ;;  %4466 = vmatprep.subr.bf16.mxu1 %v4821_v39  ;;  %v2189_v49 = vrot.slane %v2187_v36, 5  ;;  %v2207_v52 = vshll.u32 %v5476_v42, 16  ;;  %v2212_v14 = vshrl.u32 %v2023_v63, 16  ;;  %v2154_v21 = vsel %vm5164_vm8, %v2149_v60, %v2153_v31  ;;  %v2025_v16 = vld [vmem:[#allocation2 + $0x88] sm:$0xf] }
 0x1a4   :  { %4353 = vmatmul.mubr.bf16.gmra.mrb[36].mxu0 %v3966_v17  ;;  %v2168_v55 = vsel %vm5164_vm8, %v2163_v38, %v2167_v59  ;;  %v2177_v53 = vrot.slane %v2176_v24, 4  ;;  %v2200_v19 = vrot.slane %v2198_v40, 4  ;;  %v2181_v17 = vrot.slane %v2179_v28, 5  ;;  %v5492_v40 = vld [vmem:[#allocation2 + $0x8c] sm:$0x1] }
 0x1a5   :  { %4356 = vmatprep.mubr.bf16.mxu0 %v3967_v35  ;;  %4369 = vmatpush3.bf16.msra.mxu0 %v4823_v5  ;;  %v4031_v61 = vcombine.low %v2154_v21, %v2168_v55  ;;  %v2190_v11 = vor.u32 %v2189_v49, %v2186_v47  ;;  %v2203_v58 = vrot.slane %v2201_v23, 5  ;;  %v2195_v31 = vrot.slane %v2193_v0, 5  ;;  %v2027_v35 = vld [vmem:[#allocation2 + $0x90] sm:$0xf] }
 0x1a6   :  { %4467 = vmatpush3.bf16.msra.mxu1 %v4821_v39  ;;  %4370 = vmatprep.subr.bf16.mxu0 %v4826_v54  ;;  %v2209_v60 = vrot.slane %v2207_v52, 5  ;;  %v2214_v36 = vrot.slane %v2212_v14, 4  ;;  %v2215_v59 = vshll.u32 %v2023_v63, 16  ;;  %v2182_v5 = vsel %vm5164_vm8, %v2177_v53, %v2181_v17  ;;  %v5498_v14 = vld [vmem:[#allocation2 + $0x94] sm:$0x1]  ;;  %v4832_v17 = vld [vmem:[#allocation8 + $0xa8] sm:$0xff]  }
 0x1a7   :  { %4468 = vmatprep.subr.bf16.mxu1 %v4824_v7  ;;  %4452 = vmatprep.mubr.bf16.mxu1 %v4031_v61  ;;  %v2191_v38 = vrot.slane %v2190_v11, 4  ;;  %v2204_v24 = vor.u32 %v2203_v58, %v2200_v19  ;;  %v2221_v39 = vshll.u32 %v5485_v26, 16  ;;  %v3968_v47 = vcombine.low %v5329_v20, %v5342_v6  ;;  %v4830_v20 = vld [vmem:[#allocation8 + $0x170] sm:$0xff]  }
 0x1a8   :  { %v2217_v28 = vrot.slane %v2215_v59, 5  ;;  %v2226_v0 = vshrl.u32 %v2025_v16, 16  ;;  %v2229_v49 = vshll.u32 %v2025_v16, 16  ;;  %v3969_v52 = vcombine.low %v5352_v15, %v5359_v27  ;;  %v2464_v61 = vld [vmem:[#allocation2 + $0x10] sm:$0xe] }
 0x1a9   :  { %4371 = vmatpush3.bf16.msra.mxu0 %v4826_v54  ;;  %v2196_v63 = vsel %vm5164_vm8, %v2191_v38, %v2195_v31  ;;  %v2205_v23 = vrot.slane %v2204_v24, 4  ;;  %v2240_v21 = vshrl.u32 %v2027_v35, 16  ;;  %v2463_v54 = vld [vmem:[#allocation2 + $0x8] sm:$0xe]  ;;  %v2223_v11 = vrot.slane %v2221_v39, 5 }
 0x1aa   :  { %4469 = vmatpush3.bf16.msra.mxu1 %v4824_v7  ;;  %4372 = vmatprep.subr.bf16.mxu0 %v4829_v57  ;;  %v4032_v55 = vcombine.low %v2182_v5, %v2196_v63  ;;  %v2218_v53 = vor.u32 %v2217_v28, %v2214_v36  ;;  %v2228_v6 = vrot.slane %v2226_v0, 4  ;;  %v2231_v19 = vrot.slane %v2229_v49, 5  ;;  %v1431_v31 = vld [vmem:[#allocation2 + $0x8] sm:$0xe]  ;;  %v4833_v49 = vld [vmem:[#allocation8 + $0x178] sm:$0xff]   ;;  %v4835_v63 = vld [vmem:[#allocation8 + $0xb0] sm:$0xff]  }
 0x1ab   :  { %4470 = vmatprep.subr.bf16.mxu1 %v4827_v51  ;;  %v2235_v7 = vshll.u32 %v5492_v40, 16  ;;  %v2242_v58 = vrot.slane %v2240_v21, 4  ;;  %v2243_v16 = vshll.u32 %v2027_v35, 16  ;;  %v2249_v59 = vshll.u32 %v5498_v14, 16  ;;  %v2466_v21 = vld [vmem:[#allocation2 + $0x20] sm:$0xe] }
 0x1ac   :  { %4357 = vmatmul.mubr.bf16.gmra.mrb[40].mxu0 %v3968_v47  ;;  %4453 = vmatmul.mubr.bf16.gmra.mrb[8].mxu1 %v4032_v55  ;;  %v2219_v15 = vrot.slane %v2218_v53, 4  ;;  %v2232_v27 = vor.u32 %v2231_v19, %v2228_v6  ;;  %v4043_v5 = vrot.slane %v2463_v54, 9  ;;  %v2513_v24 = vrot.slane %v5389_v18, 5  ;;  %v4870_v53 = vld [vmem:[#allocation2 + $0xc] sm:$0x1] }
 0x1ad   :  { %4360 = vmatprep.mubr.bf16.mxu0 %v3969_v52  ;;  %4373 = vmatpush3.bf16.msra.mxu0 %v4829_v57  ;;  %v2245_v38 = vrot.slane %v2243_v16, 5  ;;  %v4044_v35 = vrot.slane %v2464_v61, 9  ;;  %v2517_v39 = vrot.slane %v5391_v48, 5  ;;  %v2210_v28 = vsel %vm5164_vm8, %v2205_v23, %v2209_v60  ;;  %v5522_v23 = vld [vmem:[#allocation8 + $0x180] sm:$0xff]  }
 0x1ae   :  { %4471 = vmatpush3.bf16.msra.mxu1 %v4827_v51  ;;  %v2224_v47 = vsel %vm5164_vm8, %v2219_v15, %v2223_v11  ;;  %v2233_v0 = vrot.slane %v2232_v27, 4  ;;  %4374 = vmatprep.subr.bf16.mxu0 %v4832_v17  ;;  %v5915_v57 = vrot.slane %v5143_v22, 5  ;;  %v5916_v18 = vrot.slane %v5307_v13, 9  ;;  %v2465_v11 = vld [vmem:[#allocation2 + $0x18] sm:$0xe] }
 0x1af   :  { %4472 = vmatprep.subr.bf16.mxu1 %v4830_v20  ;;  %v4033_v52 = vcombine.low %v2210_v28, %v2224_v47  ;;  %v2246_v51 = vor.u32 %v2245_v38, %v2242_v58  ;;  %v2237_v54 = vrot.slane %v2235_v7, 5  ;;  %v2518_v60 = vsel %vm5504_vm11, %v4044_v35, %v2517_v39  ;;  %v2468_v7 = vld [vmem:[#allocation2 + $0x30] sm:$0xe]  ;;  %v1433_v27 = vld [vmem:[#allocation2 + $0x18] sm:$0xe] }
 0x1b0   :  { %v1484_v48 = vsel %vm5504_vm11, %v5916_v18, %v5915_v57  ;;  %v3980_v55 = vrot.slane %v1431_v31, 9  ;;  %v1487_v6 = vrot.slane %v4870_v53, 5  ;;  %v2251_v61 = vrot.slane %v2249_v59, 5  ;;  %v1434_v38 = vld [vmem:[#allocation2 + $0x20] sm:$0xe]  ;;  %v4837_v28 = vld [vmem:[#allocation8 + $0xb8] sm:$0xff]  }
 0x1b1   :  { %4456 = vmatprep.mubr.bf16.mxu1 %v4033_v52  ;;  %v2247_v19 = vrot.slane %v2246_v51, 4  ;;  %v2514_v22 = vsel %vm5504_vm11, %v4043_v5, %v2513_v24  ;;  %v3970_v13 = vcombine.low %v5393_v10, %v5395_v2  ;;  %v2238_v58 = vsel %vm5164_vm8, %v2233_v0, %v2237_v54  ;;  %4375 = vmatpush3.bf16.msra.mxu0 %v4832_v17  ;;  %v1432_v2 = vld [vmem:[#allocation2 + $0x10] sm:$0xe]  ;;  %v1435_v47 = vld [vmem:[#allocation2 + $0x28] sm:$0xe] }
 0x1b2   :  { %4473 = vmatpush3.bf16.msra.mxu1 %v4830_v20  ;;  %v1488_v16 = vsel %vm5504_vm11, %v3980_v55, %v1487_v6  ;;  %v4046_v31 = vrot.slane %v2466_v21, 9  ;;  %v2525_v15 = vrot.slane %v5421_v29, 5  ;;  %v2467_v20 = vld [vmem:[#allocation2 + $0x28] sm:$0xe]  ;;  %v4059_v5 = vcombine.low %v2514_v22, %v2518_v60  ;;  %4376 = vmatprep.subr.bf16.mxu0 %v4835_v63  ;;  %v4873_v60 = vld [vmem:[#allocation2 + $0x24] sm:$0x1] }
 0x1b3   :  { %4474 = vmatprep.subr.bf16.mxu1 %v4833_v49  ;;  %v2252_v59 = vsel %vm5164_vm8, %v2247_v19, %v2251_v61  ;;  %v3995_v10 = vcombine.low %v1484_v48, %v1488_v16  ;;  %v4045_v35 = vrot.slane %v2465_v11, 9  ;;  %v4048_v17 = vrot.slane %v2468_v7, 9  ;;  %v4871_v48 = vld [vmem:[#allocation2 + $0x14] sm:$0x1]  ;;  %v4874_v53 = vld [vmem:[#allocation2 + $0x2c] sm:$0x1] }
 0x1b4   :  { %4361 = vmatmul.mubr.bf16.gmra.mrb[44].mxu0 %v3970_v13  ;;  %v4034_v24 = vcombine.low %v2238_v58, %v2252_v59  ;;  %v2533_v39 = vrot.slane %v5432_v32, 5  ;;  %v2521_v29 = vrot.slane %v5415_v8, 5  ;;  %v4047_v0 = vrot.slane %v2467_v20, 9  ;;  %v4872_v32 = vld [vmem:[#allocation2 + $0x1c] sm:$0x1]  ;;  %v5543_v61 = vld [vmem:[#allocation8 + $0x200] sm:$0xff]  }
 0x1b5   :  { %4380 = vmatprep.mubr.bf16.mxu0 %v3995_v10  ;;  %v2529_v52 = vrot.slane %v5423_v41, 5  ;;  %v3982_v51 = vrot.slane %v1433_v27, 9  ;;  %v2526_v57 = vsel %vm5504_vm11, %v4046_v31, %v2525_v15  ;;  %v3981_v18 = vrot.slane %v1432_v2, 9  ;;  %4377 = vmatpush3.bf16.msra.mxu0 %v4835_v63  ;;  %v2470_v6 = vld [vmem:[#allocation2 + $0x40] sm:$0xe] }
 0x1b6   :  { %4475 = vmatpush3.bf16.msra.mxu1 %v4833_v49  ;;  %v1491_v21 = vrot.slane %v4871_v48, 5  ;;  %v1495_v54 = vrot.slane %v4872_v32, 5  ;;  %v3983_v49 = vrot.slane %v1434_v38, 9  ;;  %v1499_v8 = vrot.slane %v4873_v60, 5  ;;  %4378 = vmatprep.subr.bf16.mxu0 %v4837_v28  ;;  %v2469_v22 = vld [vmem:[#allocation2 + $0x38] sm:$0xe] }
 0x1b7   :  { %4457 = vmatmul.mubr.bf16.gmra.mrb[12].mxu1 %v4034_v24  ;;  %4492 = vmatprep.subr.bf16.mxu1 %v5522_v23  ;;  %v3984_v55 = vrot.slane %v1435_v47, 9  ;;  %v1503_v41 = vrot.slane %v4874_v53, 5  ;;  %v2534_v19 = vsel %vm5504_vm11, %v4048_v17, %v2533_v39  ;;  %v2522_v13 = vsel %vm5504_vm11, %v4045_v35, %v2521_v29  ;;  %v2471_v7 = vld [vmem:[#allocation2 + $0x58] sm:$0xe]  ;;  %v2472_v20 = vld [vmem:[#allocation2 + $0x60] sm:$0xe] }
 0x1b8   :  { %4476 = vmatprep.mubr.bf16.mxu1 %v4059_v5  ;;  %v1496_v63 = vsel %vm5504_vm11, %v3982_v51, %v1495_v54  ;;  %v4060_v58 = vcombine.low %v2522_v13, %v2526_v57  ;;  %v2530_v16 = vsel %vm5504_vm11, %v4047_v0, %v2529_v52  ;;  %v4050_v31 = vrot.slane %v2470_v6, 9  ;;  %v1437_v27 = vld [vmem:[#allocation2 + $0x38] sm:$0xe]  ;;  %v4838_v5 = vld [vmem:[#allocation8 + $0x188] sm:$0xff]   ;;  %v1436_v24 = vld [vmem:[#allocation2 + $0x30] sm:$0xe] }
 0x1b9   :  { %v1504_v11 = vsel %vm5504_vm11, %v3984_v55, %v1503_v41  ;;  %v2541_v15 = vrot.slane %v5446_v43, 5  ;;  %v4061_v59 = vcombine.low %v2530_v16, %v2534_v19  ;;  %4379 = vmatpush3.bf16.msra.mxu0 %v4837_v28  ;;  %v1492_v10 = vsel %vm5504_vm11, %v3981_v18, %v1491_v21  ;;  %v1438_v47 = vld [vmem:[#allocation2 + $0x50] sm:$0xe]  ;;  %v1439_v29 = vld [vmem:[#allocation2 + $0x58] sm:$0xe]  ;;  %v5564_v21 = vld [vmem:[#allocation8 + $0x208] sm:$0xff]  }
 0x1ba   :  { %v1500_v2 = vsel %vm5504_vm11, %v3983_v49, %v1499_v8  ;;  %v4049_v38 = vrot.slane %v2469_v22, 9  ;;  %v3996_v35 = vcombine.low %v1492_v10, %v1496_v63  ;;  %4556 = vmatprep.subr.bf16.mxu0 %v5543_v61  ;;  %v2537_v39 = vrot.slane %v5434_v33, 5  ;;  %v4875_v51 = vld [vmem:[#allocation2 + $0x3c] sm:$0x1]  ;;  %v4876_v33 = vld [vmem:[#allocation2 + $0x34] sm:$0x1] }
 0x1bb   :  { %v3997_v17 = vcombine.low %v1500_v2, %v1504_v11  ;;  %v4051_v43 = vrot.slane %v2471_v7, 9  ;;  %v4052_v0 = vrot.slane %v2472_v20, 9  ;;  %v2549_v28 = vrot.slane %v5458_v45, 5  ;;  %v4877_v45 = vld [vmem:[#allocation2 + $0x54] sm:$0x1]  ;;  %v4841_v63 = vld [vmem:[#allocation8 + $0x198] sm:$0xff]  }
 0x1bc   :  { %v3986_v52 = vrot.slane %v1437_v27, 9  ;;  %v1511_v57 = vrot.slane %v4875_v51, 5  ;;  %4381 = vmatmul.mubr.bf16.vlgmr.msra.gmra.mrb[32].mxu0 %v3996_v35  ;;  %v2542_v18 = vsel %vm5504_vm11, %v4050_v31, %v2541_v15  ;;  %v2545_v48 = vrot.slane %v5448_v37, 5  ;;  %v4839_v53 = vld [vmem:[#allocation8 + $0x190] sm:$0xff]   ;;  %v2476_v22 = vld [vmem:[#allocation2 + $0x80] sm:$0xe] }
 0x1bd   :  { %v3985_v32 = vrot.slane %v1436_v24, 9  ;;  %v1507_v54 = vrot.slane %v4876_v33, 5  ;;  %v3987_v49 = vrot.slane %v1438_v47, 9  ;;  %v1515_v60 = vrot.slane %v4877_v45, 5  ;;  %4384 = vmatprep.mubr.bf16.mxu0 %v3997_v17  ;;  %4557 = vmatpush3.bf16.msra.mxu0 %v5543_v61  ;;  %v2474_v6 = vld [vmem:[#allocation2 + $0x70] sm:$0xe] }
 0x1be   :  { %v3988_v8 = vrot.slane %v1439_v29, 9  ;;  %v1519_v55 = vrot.slane %v5326_v25, 5  ;;  %v2538_v37 = vsel %vm5504_vm11, %v4049_v38, %v2537_v39  ;;  %v2550_v41 = vsel %vm5504_vm11, %v4052_v0, %v2549_v28  ;;  %4558 = vmatprep.subr.bf16.mxu0 %v5564_v21  ;;  %v1441_v25 = vld [vmem:[#allocation2 + $0x68] sm:$0xe]  ;;  %v5580_v7 = vld [vmem:[#allocation8 + $0x210] sm:$0xff]   ;;  %v5591_v29 = vld [vmem:[#allocation8 + $0x218] sm:$0xff]  }
 0x1bf   :  { %4477 = vmatmul.mubr.bf16.vlgmr.msra.gmra.mrb[0].mxu1 %v4060_v58  ;;  %v4062_v19 = vcombine.low %v2538_v37, %v2542_v18  ;;  %v2546_v13 = vsel %vm5504_vm11, %v4051_v43, %v2545_v48  ;;  %v1508_v11 = vsel %vm5504_vm11, %v3985_v32, %v1507_v54  ;;  %v1516_v58 = vsel %vm5504_vm11, %v3987_v49, %v1515_v60  ;;  %v2473_v31 = vld [vmem:[#allocation2 + $0x68] sm:$0xe]  ;;  %v1440_v10 = vld [vmem:[#allocation2 + $0x60] sm:$0xe]  ;;  %v1443_v17 = vld [vmem:[#allocation2 + $0x78] sm:$0xe] }
 0x1c0   :  { %4493 = vmatpush3.bf16.msra.mxu1 %v5522_v23  ;;  %4480 = vmatprep.mubr.bf16.mxu1 %v4061_v59  ;;  %v1512_v23 = vsel %vm5504_vm11, %v3986_v52, %v1511_v57  ;;  %v1520_v16 = vsel %vm5504_vm11, %v3988_v8, %v1519_v55  ;;  %v4063_v15 = vcombine.low %v2546_v13, %v2550_v41  ;;  %v4054_v27 = vrot.slane %v2474_v6, 9  ;;  %v4878_v52 = vld [vmem:[#allocation2 + $0x64] sm:$0x1]  ;;  %v1442_v51 = vld [vmem:[#allocation2 + $0x70] sm:$0xe]  ;;  %v4845_v60 = vld [vmem:[#allocation8 + $0x1a8] sm:$0xff]  }
 0x1c1   :  { %4494 = vmatprep.subr.bf16.mxu1 %v4838_v5  ;;  %v3998_v20 = vcombine.low %v1508_v11, %v1512_v23  ;;  %v2557_v59 = vrot.slane %v5474_v3, 5  ;;  %4559 = vmatpush3.bf16.msra.mxu0 %v5564_v21  ;;  %v4056_v2 = vrot.slane %v2476_v22, 9  ;;  %v2565_v38 = vrot.slane %v5485_v26, 5  ;;  %v2478_v54 = vld [vmem:[#allocation2 + $0x90] sm:$0xe]  ;;  %v5611_v23 = vld [vmem:[#allocation8 + $0x220] sm:$0xff]  }
 0x1c2   :  { %v3990_v24 = vrot.slane %v1441_v25, 9  ;;  %v1527_v35 = vrot.slane %v5347_v4, 5  ;;  %v3999_v39 = vcombine.low %v1516_v58, %v1520_v16  ;;  %v4053_v43 = vrot.slane %v2473_v31, 9  ;;  %v4843_v4 = vld [vmem:[#allocation8 + $0x1a0] sm:$0xff]   ;;  %4560 = vmatprep.subr.bf16.mxu0 %v5580_v7  ;;  %v1445_v49 = vld [vmem:[#allocation2 + $0x88] sm:$0xe] }
 0x1c3   :  { %v2553_v47 = vrot.slane %v5469_v30, 5  ;;  %v2561_v0 = vrot.slane %v5476_v42, 5  ;;  %v3989_v28 = vrot.slane %v1440_v10, 9  ;;  %v1523_v26 = vrot.slane %v4878_v52, 5  ;;  %v2477_v55 = vld [vmem:[#allocation2 + $0x88] sm:$0xe] }
 0x1c4   :  { %4495 = vmatpush3.bf16.msra.mxu1 %v4838_v5  ;;  %v2475_v5 = vld [vmem:[#allocation2 + $0x78] sm:$0xe]  ;;  %4385 = vmatmul.mubr.bf16.gmra.mrb[36].mxu0 %v3998_v20  ;;  %v3992_v57 = vrot.slane %v1443_v17, 9  ;;  %v1535_v18 = vrot.slane %v5361_v44, 5  ;;  %v2558_v30 = vsel %vm5504_vm11, %v4054_v27, %v2557_v59  ;;  %v2566_v42 = vsel %vm5504_vm11, %v4056_v2, %v2565_v38  ;;  %v1444_v6 = vld [vmem:[#allocation2 + $0x80] sm:$0xe] }
 0x1c5   :  { %4496 = vmatprep.subr.bf16.mxu1 %v4839_v53  ;;  %v4055_v3 = vrot.slane %v2475_v5, 9  ;;  %4388 = vmatprep.mubr.bf16.mxu0 %v3999_v39  ;;  %v1528_v48 = vsel %vm5504_vm11, %v3990_v24, %v1527_v35  ;;  %v3991_v32 = vrot.slane %v1442_v51, 9  ;;  %v1531_v33 = vrot.slane %v5357_v62, 5  ;;  %v3495_v11 = vld [vmem:[#allocation2 + $0x18] sm:$0xe]  ;;  %v5622_v31 = vld [vmem:[#allocation8 + $0x228] sm:$0xff]  }
 0x1c6   :  { %4561 = vmatpush3.bf16.msra.mxu0 %v5580_v7  ;;  %v2554_v44 = vsel %vm5504_vm11, %v4053_v43, %v2553_v47  ;;  %v1524_v8 = vsel %vm5504_vm11, %v3989_v28, %v1523_v26  ;;  %v1536_v62 = vsel %vm5504_vm11, %v3992_v57, %v1535_v18  ;;  %v4058_v22 = vrot.slane %v2478_v54, 9  ;;  %v4847_v5 = vld [vmem:[#allocation8 + $0x1b0] sm:$0xff]   ;;  %v4850_v17 = vld [vmem:[#allocation8 + $0x1b8] sm:$0xff]   ;;  %v5645_v28 = vld [vmem:[#allocation2 + $0x2c] sm:$0x1] }
 0x1c7   :  { %4481 = vmatmul.mubr.bf16.gmra.mrb[4].mxu1 %v4062_v19  ;;  %4562 = vmatprep.subr.bf16.mxu0 %v5591_v29  ;;  %v2562_v45 = vsel %vm5504_vm11, %v4055_v3, %v2561_v0  ;;  %v4000_v41 = vcombine.low %v1524_v8, %v1528_v48  ;;  %v5615_v19 = vld [vmem:[#allocation2 + $0x1c] sm:$0x1]  ;;  %v2573_v25 = vrot.slane %v5498_v14, 5  ;;  %v3994_v13 = vrot.slane %v1445_v49, 9  ;;  %v5641_v3 = vld [vmem:[#allocation8 + $0x230] sm:$0xff]  }
 0x1c8   :  { %4497 = vmatpush3.bf16.msra.mxu1 %v4839_v53  ;;  %4484 = vmatprep.mubr.bf16.mxu1 %v4063_v15  ;;  %v4064_v53 = vcombine.low %v2554_v44, %v2558_v30  ;;  %v4065_v37 = vcombine.low %v2562_v45, %v2566_v42  ;;  %v1532_v58 = vsel %vm5504_vm11, %v3991_v32, %v1531_v33  ;;  %v4057_v16 = vrot.slane %v2477_v55, 9  ;;  %v5624_v15 = vld [vmem:[#allocation2 + $0x14] sm:$0x1]  ;;  %v3497_v52 = vld [vmem:[#allocation2 + $0x28] sm:$0xe]  ;;  %v5652_v18 = vld [vmem:[#allocation8 + $0x238] sm:$0xff]  }
 0x1c9   :  { %4498 = vmatprep.subr.bf16.mxu1 %v4841_v63  ;;  %v4001_v20 = vcombine.low %v1532_v58, %v1536_v62  ;;  %v2569_v27 = vrot.slane %v5492_v40, 5  ;;  %v3993_v14 = vrot.slane %v1444_v6, 9  ;;  %v1539_v59 = vrot.slane %v5397_v34, 5  ;;  %v4849_v26 = vld [vmem:[#allocation2 + $0x10] ss:$8 sps:$4 sm:$0xff]   ;;  %v4852_v44 = vld [vmem:[#allocation8 + $0x1c0] sm:$0xff]  }
 0x1ca   :  { %4563 = vmatpush3.bf16.msra.mxu0 %v5591_v29  ;;  %v4108_v10 = vrot.slane %v3495_v11, 9  ;;  %v3548_v2 = vrot.slane %v5615_v19, 5  ;;  %v2574_v38 = vsel %vm5504_vm11, %v4058_v22, %v2573_v25  ;;  %v3544_v24 = vrot.slane %v5624_v15, 5  ;;  %v5648_v51 = vld [vmem:[#allocation2 + $0x3c] sm:$0x1] }
 0x1cb   :  { %4564 = vmatprep.subr.bf16.mxu0 %v5611_v23  ;;  %v2570_v35 = vsel %vm5504_vm11, %v4057_v16, %v2569_v27  ;;  %v1540_v39 = vsel %vm5504_vm11, %v3993_v14, %v1539_v59  ;;  %v5654_v30 = vld [vmem:[#allocation2 + $0x24] sm:$0x1]  ;;  %v3496_v42 = vld [vmem:[#allocation2 + $0x20] sm:$0xe]  ;;  %v4110_v32 = vrot.slane %v3497_v52, 9  ;;  %v3556_v33 = vrot.slane %v5645_v28, 5 }
 0x1cc   :  { %4499 = vmatpush3.bf16.msra.mxu1 %v4841_v63  ;;  %v1543_v63 = vrot.slane %v5407_v9, 5  ;;  %4389 = vmatmul.mubr.bf16.gmra.mrb[40].mxu0 %v4000_v41  ;;  %v3494_v9 = vld [vmem:[#allocation2 + $0x10] sm:$0xe]  ;;  %v4066_v43 = vcombine.low %v2570_v35, %v2574_v38  ;;  %v3549_v0 = vsel %vm5504_vm11, %v4108_v10, %v3548_v2  ;;  %v5657_v54 = vld [vmem:[#allocation2 + $0x34] sm:$0x1]  ;;  %v4109_v8 = vrot.slane %v3496_v42, 9 }
 0x1cd   :  { %4500 = vmatprep.subr.bf16.mxu1 %v4843_v4  ;;  %4392 = vmatprep.mubr.bf16.mxu0 %v4001_v20  ;;  %v4107_v34 = vrot.slane %v3494_v9, 9  ;;  %v3498_v49 = vld [vmem:[#allocation2 + $0x30] sm:$0xe]  ;;  %v3552_v55 = vrot.slane %v5654_v30, 5  ;;  %v4856_v41 = vld [vmem:[#allocation8 + $0x1c8] sm:$0xff]   ;;  %v3557_v62 = vsel %vm5504_vm11, %v4110_v32, %v3556_v33 }
 0x1ce   :  { %4565 = vmatpush3.bf16.msra.mxu0 %v5611_v23  ;;  %v1544_v40 = vsel %vm5504_vm11, %v3994_v13, %v1543_v63  ;;  %v5667_v6 = vld [vmem:[#allocation2 + $0x44] sm:$0x1]  ;;  %v3500_v22 = vld [vmem:[#allocation2 + $0x40] sm:$0xe]  ;;  %v5671_v63 = vld [vmem:[#allocation2 + $0x4c] sm:$0x1] }
 0x1cf   :  { %4485 = vmatmul.mubr.bf16.gmra.mrb[8].mxu1 %v4064_v53  ;;  %4566 = vmatprep.subr.bf16.mxu0 %v5622_v31  ;;  %v4002_v47 = vcombine.low %v1540_v39, %v1544_v40  ;;  %v3545_v57 = vsel %vm5504_vm11, %v4107_v34, %v3544_v24  ;;  %v4111_v53 = vrot.slane %v3498_v49, 9  ;;  %v4854_v25 = vld [vmem:[#allocation2 + $0x20] ss:$8 sps:$4 sm:$0xff]   ;;  %v4855_v58 = vld [vmem:[#allocation2 + $0x30] ss:$8 sps:$4 sm:$0xff]   ;;  %v3553_v16 = vsel %vm5504_vm11, %v4109_v8, %v3552_v55 }
 0x1d0   :  { %4501 = vmatpush3.bf16.msra.mxu1 %v4843_v4  ;;  %4488 = vmatprep.mubr.bf16.mxu1 %v4065_v37  ;;  %v3499_v4 = vld [vmem:[#allocation2 + $0x38] sm:$0xe]  ;;  %v4123_v48 = vcombine.low %v3545_v57, %v3549_v0  ;;  %v3560_v37 = vrot.slane %v5657_v54, 5  ;;  %v3501_v11 = vld [vmem:[#allocation2 + $0x48] sm:$0xe]  ;;  %v4124_v27 = vcombine.low %v3553_v16, %v3557_v62  ;;  %v4113_v59 = vrot.slane %v3500_v22, 9 }
 0x1d1   :  { %4502 = vmatprep.subr.bf16.mxu1 %v4845_v60  ;;  %v4112_v45 = vrot.slane %v3499_v4, 9  ;;  %v3030_v20 = vld [vmem:[#allocation2 + $0x18] sm:$0xf]  ;;  %v3568_v9 = vrot.slane %v5667_v6, 5  ;;  %v4114_v10 = vrot.slane %v3501_v11, 9  ;;  %v3572_v2 = vrot.slane %v5671_v63, 5 }
 0x1d2   :  { %4567 = vmatpush3.bf16.msra.mxu0 %v5622_v31  ;;  %v3561_v14 = vsel %vm5504_vm11, %v4111_v53, %v3560_v37  ;;  %v3028_v38 = vld [vmem:[#allocation2 + $0x10] sm:$0xf]  ;;  %v3075_v34 = vshrl.u32 %v3030_v20, 16  ;;  %v3078_v24 = vshll.u32 %v3030_v20, 16  ;;  %v3034_v35 = vld [vmem:[#allocation2 + $0x28] sm:$0xf] }
 0x1d3   :  { %4568 = vmatprep.subr.bf16.mxu0 %v5641_v3  ;;  %v4858_v40 = vld [vmem:[#allocation8 + $0x1d0] sm:$0xff]   ;;  %v3061_v39 = vshrl.u32 %v3028_v38, 16  ;;  %v3032_v0 = vld [vmem:[#allocation2 + $0x20] sm:$0xf]  ;;  %v3103_v52 = vshrl.u32 %v3034_v35, 16  ;;  %v4861_v57 = vld [vmem:[#allocation8 + $0x1d8] sm:$0xff]  }
 0x1d4   :  { %4503 = vmatpush3.bf16.msra.mxu1 %v4845_v60  ;;  %4393 = vmatmul.mubr.bf16.gmra.mrb[44].mxu0 %v4002_v47  ;;  %v3564_v60 = vrot.slane %v5648_v51, 5  ;;  %v3064_v47 = vshll.u32 %v3028_v38, 16  ;;  %v4859_v4 = vld [vmem:[#allocation2 + $0x40] ss:$8 sps:$4 sm:$0xff]   ;;  %v3077_v42 = vrot.slane %v3075_v34, 4  ;;  %v3070_v62 = vshll.u32 %v5624_v15, 16 }
 0x1d5   :  { %4504 = vmatprep.subr.bf16.mxu1 %v4847_v5  ;;  %4572 = vmatprep.mubr.bf16.mxu0 %v4123_v48  ;;  %v3080_v48 = vrot.slane %v3078_v24, 5  ;;  %v4860_v32 = vld [vmem:[#allocation2 + $0x60] ss:$8 sps:$4 sm:$0xff]   ;;  %v3036_v33 = vld [vmem:[#allocation2 + $0x30] sm:$0xf]  ;;  %v3063_v8 = vrot.slane %v3061_v39, 4 }
 0x1d6   :  { %4569 = vmatpush3.bf16.msra.mxu0 %v5641_v3  ;;  %v3565_v13 = vsel %vm5504_vm11, %v4112_v45, %v3564_v60  ;;  %v3092_v45 = vshll.u32 %v3032_v0, 16  ;;  %v3038_v60 = vld [vmem:[#allocation2 + $0x38] sm:$0xf]  ;;  %v3066_v55 = vrot.slane %v3064_v47, 5  ;;  %v3105_v53 = vrot.slane %v3103_v52, 4  ;;  %v4865_v16 = vld [vmem:[#allocation8 + $0x1e8] sm:$0xff]  }
 0x1d7   :  { %4489 = vmatmul.mubr.bf16.gmra.mrb[12].mxu1 %v4066_v43  ;;  %4570 = vmatprep.subr.bf16.mxu0 %v5652_v18  ;;  %v3573_v43 = vsel %vm5504_vm11, %v4114_v10, %v3572_v2  ;;  %v3081_v22 = vor.u32 %v3080_v48, %v3077_v42  ;;  %v3131_v11 = vshrl.u32 %v3038_v60, 16  ;;  %v3084_v20 = vshll.u32 %v5615_v19, 16  ;;  %v3042_v15 = vld [vmem:[#allocation2 + $0x48] sm:$0xf] }
 0x1d8   :  { %4505 = vmatpush3.bf16.msra.mxu1 %v4847_v5  ;;  %4508 = vmatprep.mubr.bf16.mxu1 %v4849_v26  ;;  %v4125_v5 = vcombine.low %v3561_v14, %v3565_v13  ;;  %v3106_v26 = vshll.u32 %v3034_v35, 16  ;;  %v3120_v13 = vshll.u32 %v3036_v33, 16  ;;  %v3094_v14 = vrot.slane %v3092_v45, 5 }
 0x1d9   :  { %4506 = vmatprep.subr.bf16.mxu1 %v4850_v17  ;;  %v3098_v10 = vshll.u32 %v5654_v30, 16  ;;  %v3112_v38 = vshll.u32 %v5645_v28, 16  ;;  %v3072_v34 = vrot.slane %v3070_v62, 5  ;;  %v3082_v24 = vrot.slane %v3081_v22, 4 }
 0x1da   :  { %4571 = vmatpush3.bf16.msra.mxu0 %v5652_v18  ;;  %v3108_v37 = vrot.slane %v3106_v26, 5  ;;  %v3133_v39 = vrot.slane %v3131_v11, 4  ;;  %v3086_v52 = vrot.slane %v3084_v20, 5  ;;  %v3162_v30 = vshll.u32 %v3042_v15, 16 }
 0x1db   :  { %v3114_v48 = vrot.slane %v3112_v38, 5  ;;  %v3140_v62 = vshll.u32 %v5648_v51, 16  ;;  %v3050_v51 = vld [vmem:[#allocation2 + $0x78] sm:$0xf]  ;;  %v3168_v38 = vshll.u32 %v5671_v63, 16 }
 0x1dc   :  { %4507 = vmatpush3.bf16.msra.mxu1 %v4850_v17  ;;  %v3569_v17 = vsel %vm5504_vm11, %v4113_v59, %v3568_v9  ;;  %v3040_v59 = vld [vmem:[#allocation2 + $0x40] sm:$0xf]  ;;  %v4863_v9 = vld [vmem:[#allocation2 + $0x70] ss:$8 sps:$4 sm:$0xff]   ;;  %v3109_v2 = vor.u32 %v3108_v37, %v3105_v53 }
 0x1dd   :  { %4524 = vmatprep.subr.bf16.mxu1 %v4852_v44  ;;  %4573 = vmatmul.mubr.bf16.vlgmr.msra.gmra.mrb[48].mxu0 %v4124_v27  ;;  %v4126_v49 = vcombine.low %v3569_v17, %v3573_v43  ;;  %v3122_v17 = vrot.slane %v3120_v13, 5  ;;  %v3145_v43 = vshrl.u32 %v3040_v59, 16  ;;  %v3148_v47 = vshll.u32 %v3040_v59, 16  ;;  %v4867_v13 = vld [vmem:[#allocation2 + $0x90] ss:$8 sps:$4 sm:$0xff]  }
 0x1de   :  { %4576 = vmatprep.mubr.bf16.mxu0 %v4125_v5  ;;  %v3067_v5 = vor.u32 %v3066_v55, %v3063_v8  ;;  %v3110_v42 = vrot.slane %v3109_v2, 4  ;;  %v3087_v8 = vsel %vm5164_vm8, %v3082_v24, %v3086_v52  ;;  %v3154_v59 = vshll.u32 %v5667_v6, 16 }
 0x1df   :  { %4509 = vmatmul.mubr.bf16.vlgmr.msra.gmra.mrb[0].mxu1 %v4854_v25  ;;  %v3117_v25 = vshrl.u32 %v3036_v33, 16  ;;  %v3147_v53 = vrot.slane %v3145_v43, 4  ;;  %v3150_v37 = vrot.slane %v3148_v47, 5  ;;  %v3215_v43 = vshrl.u32 %v3050_v51, 16  ;;  %v3054_v47 = vld [vmem:[#allocation2 + $0x88] sm:$0xf] }
 0x1e0   :  { %4525 = vmatpush3.bf16.msra.mxu1 %v4852_v44  ;;  %4512 = vmatprep.mubr.bf16.mxu1 %v4855_v58  ;;  %v3089_v44 = vshrl.u32 %v3032_v0, 16  ;;  %v3134_v58 = vshll.u32 %v3038_v60, 16  ;;  %v3046_v0 = vld [vmem:[#allocation2 + $0x68] sm:$0xf]  ;;  %v3068_v28 = vrot.slane %v3067_v5, 4 }
 0x1e1   :  { %4526 = vmatprep.subr.bf16.mxu1 %v4856_v41  ;;  %v3119_v35 = vrot.slane %v3117_v25, 4  ;;  %v3187_v45 = vshrl.u32 %v3046_v0, 16  ;;  %v3190_v60 = vshll.u32 %v3046_v0, 16  ;;  %v3164_v25 = vrot.slane %v3162_v30, 5 }
 0x1e2   :  { %v3091_v27 = vrot.slane %v3089_v44, 4  ;;  %v3136_v19 = vrot.slane %v3134_v58, 5  ;;  %v3044_v44 = vld [vmem:[#allocation2 + $0x60] sm:$0xf]  ;;  %v3073_v11 = vsel %vm5164_vm8, %v3068_v28, %v3072_v34  ;;  %v3115_v58 = vsel %vm5164_vm8, %v3110_v42, %v3114_v48 }
 0x1e3   :  { %v3123_v33 = vor.u32 %v3122_v17, %v3119_v35  ;;  %v3173_v20 = vshrl.u32 %v3044_v44, 16  ;;  %v3192_v5 = vrot.slane %v3190_v60, 5  ;;  %v3142_v34 = vrot.slane %v3140_v62, 5  ;;  %v5700_v35 = vld [vmem:[#allocation2 + $0x64] sm:$0x1] }
 0x1e4   :  { %4527 = vmatpush3.bf16.msra.mxu1 %v4856_v41  ;;  %v4862_v41 = vld [vmem:[#allocation8 + $0x1e0] sm:$0xff]   ;;  %v3095_v26 = vor.u32 %v3094_v14, %v3091_v27  ;;  %v3137_v55 = vor.u32 %v3136_v19, %v3133_v39  ;;  %v3176_v27 = vshll.u32 %v3044_v44, 16  ;;  %v5702_v17 = vld [vmem:[#allocation2 + $0x6c] sm:$0x1]  ;;  %v3156_v0 = vrot.slane %v3154_v59, 5 }
 0x1e5   :  { %4528 = vmatprep.subr.bf16.mxu1 %v4858_v40  ;;  %4577 = vmatmul.mubr.bf16.gmra.mrb[52].mxu0 %v4126_v49  ;;  %v3126_v49 = vshll.u32 %v5657_v54, 16  ;;  %v4868_v54 = vld [vmem:[#allocation8 + $0x1f8] sm:$0xff]   ;;  %v3124_v14 = vrot.slane %v3123_v33, 4  ;;  %v3175_v39 = vrot.slane %v3173_v20, 4  ;;  %v3182_v42 = vshll.u32 %v5700_v35, 16 }
 0x1e6   :  { %v3138_v2 = vrot.slane %v3137_v55, 4  ;;  %v3178_v19 = vrot.slane %v3176_v27, 5  ;;  %v3052_v48 = vld [vmem:[#allocation2 + $0x80] sm:$0xf]  ;;  %v3196_v33 = vshll.u32 %v5702_v17, 16  ;;  %v3246_v44 = vshll.u32 %v3054_v47, 16 }
 0x1e7   :  { %4513 = vmatmul.mubr.bf16.gmra.mrb[4].mxu1 %v4859_v4  ;;  %v3159_v4 = vshrl.u32 %v3042_v15, 16  ;;  %v3217_v55 = vrot.slane %v3215_v43, 4  ;;  %v3232_v62 = vshll.u32 %v3052_v48, 16  ;;  %v3058_v27 = vld [vmem:[#allocation2 + $0x98] sm:$0xf] }
 0x1e8   :  { %4529 = vmatpush3.bf16.msra.mxu1 %v4858_v40  ;;  %4516 = vmatprep.mubr.bf16.mxu1 %v4860_v32  ;;  %v4864_v40 = vld [vmem:[#allocation2 + $0x80] ss:$8 sps:$4 sm:$0xff]   ;;  %v4866_v32 = vld [vmem:[#allocation8 + $0x1f0] sm:$0xff]   ;;  %v3143_v30 = vsel %vm5164_vm8, %v3138_v2, %v3142_v34  ;;  %v5721_v2 = vld [vmem:[#allocation2 + $0x7c] sm:$0x1] }
 0x1e9   :  { %4530 = vmatprep.subr.bf16.mxu1 %v4861_v57  ;;  %v3161_v22 = vrot.slane %v3159_v4, 4  ;;  %v3218_v4 = vshll.u32 %v3050_v51, 16 }
 0x1eb   :  { %v3165_v24 = vor.u32 %v3164_v25, %v3161_v22 }
 0x1ec   :  { %4531 = vmatpush3.bf16.msra.mxu1 %v4861_v57  ;;  %v3100_v57 = vrot.slane %v3098_v10, 5  ;;  %v4091_v10 = vcombine.low %v3073_v11, %v3087_v8  ;;  %v3184_v11 = vrot.slane %v3182_v42, 5 }
 0x1ed   :  { %4532 = vmatprep.subr.bf16.mxu1 %v4862_v41 }
 0x1ef   :  { %4517 = vmatmul.mubr.bf16.gmra.mrb[8].mxu1 %v4863_v9  ;;  %v3189_v9 = vrot.slane %v3187_v45, 4  ;;  %v3179_v45 = vor.u32 %v3178_v19, %v3175_v39 }
 0x1f0   :  { %4533 = vmatpush3.bf16.msra.mxu1 %v4862_v41  ;;  %4520 = vmatprep.mubr.bf16.mxu1 %v4864_v40  ;;  %v3096_v41 = vrot.slane %v3095_v26, 4  ;;  %v3128_v40 = vrot.slane %v3126_v49, 5  ;;  %v3048_v26 = vld [vmem:[#allocation2 + $0x70] sm:$0xf]  ;;  %v3243_v49 = vshrl.u32 %v3054_v47, 16 }
 0x1f1   :  { %4534 = vmatprep.subr.bf16.mxu1 %v4865_v16  ;;  %v3193_v52 = vor.u32 %v3192_v5, %v3189_v9  ;;  %v3201_v60 = vshrl.u32 %v3048_v26, 16  ;;  %v3204_v8 = vshll.u32 %v3048_v26, 16  ;;  %v3180_v59 = vrot.slane %v3179_v45, 4  ;;  %v5716_v9 = vld [vmem:[#allocation2 + $0x74] sm:$0x1] }
 0x1f2   :  { %v3101_v15 = vsel %vm5164_vm8, %v3096_v41, %v3100_v57  ;;  %v3129_v63 = vsel %vm5164_vm8, %v3124_v14, %v3128_v40  ;;  %v3170_v57 = vrot.slane %v3168_v38, 5  ;;  %v3229_v41 = vshrl.u32 %v3052_v48, 16  ;;  %v5736_v45 = vld [vmem:[#allocation2 + $0x94] sm:$0x1] }
 0x1f3   :  { %v4092_v6 = vcombine.low %v3101_v15, %v3115_v58  ;;  %v4093_v22 = vcombine.low %v3129_v63, %v3143_v30  ;;  %v3198_v58 = vrot.slane %v3196_v33, 5  ;;  %v3245_v20 = vrot.slane %v3243_v49, 4 }
 0x1f4   :  { %4535 = vmatpush3.bf16.msra.mxu1 %v4865_v16  ;;  %v3151_v16 = vor.u32 %v3150_v37, %v3147_v53  ;;  %v3194_v53 = vrot.slane %v3193_v52, 4  ;;  %v3220_v37 = vrot.slane %v3218_v4, 5  ;;  %v3203_v5 = vrot.slane %v3201_v60, 4  ;;  %v5730_v52 = vld [vmem:[#allocation2 + $0x84] sm:$0x1] }
 0x1f5   :  { %4536 = vmatprep.subr.bf16.mxu1 %v4866_v32  ;;  %v3206_v51 = vrot.slane %v3204_v8, 5  ;;  %v3231_v38 = vrot.slane %v3229_v41, 4  ;;  %v3234_v15 = vrot.slane %v3232_v62, 5  ;;  %v3210_v39 = vshll.u32 %v5716_v9, 16 }
 0x1f6   :  { %v3152_v28 = vrot.slane %v3151_v16, 4  ;;  %v3221_v16 = vor.u32 %v3220_v37, %v3217_v55  ;;  %v3185_v47 = vsel %vm5164_vm8, %v3180_v59, %v3184_v11  ;;  %v3266_v11 = vshll.u32 %v5736_v45, 16 }
 0x1f7   :  { %4521 = vmatmul.mubr.bf16.gmra.mrb[12].mxu1 %v4867_v13  ;;  %v3056_v13 = vld [vmem:[#allocation2 + $0x90] sm:$0xf]  ;;  %v3207_v63 = vor.u32 %v3206_v51, %v3203_v5  ;;  %v3235_v30 = vor.u32 %v3234_v15, %v3231_v38  ;;  %v3212_v60 = vrot.slane %v3210_v39, 5  ;;  %v3502_v51 = vld [vmem:[#allocation2 + $0x60] sm:$0xe]  ;;  %v3576_v15 = vrot.slane %v5700_v35, 5 }
 0x1f8   :  { %4537 = vmatpush3.bf16.msra.mxu1 %v4866_v32  ;;  %4540 = vmatprep.mubr.bf16.mxu1 %v4091_v10  ;;  %v3166_v32 = vrot.slane %v3165_v24, 4  ;;  %v3157_v25 = vsel %vm5164_vm8, %v3152_v28, %v3156_v0  ;;  %v3199_v10 = vsel %vm5164_vm8, %v3194_v53, %v3198_v58  ;;  %v3257_v40 = vshrl.u32 %v3056_v13, 16  ;;  %v5739_v53 = vld [vmem:[#allocation2 + $0x9c] sm:$0x1]  ;;  %v3503_v58 = vld [vmem:[#allocation2 + $0x68] sm:$0xe] }
 0x1f9   :  { %4538 = vmatprep.subr.bf16.mxu1 %v4868_v54  ;;  %v3260_v34 = vshll.u32 %v3056_v13, 16  ;;  %v3271_v24 = vshrl.u32 %v3058_v27, 16  ;;  %v3224_v0 = vshll.u32 %v5721_v2, 16  ;;  %v4095_v26 = vcombine.low %v3185_v47, %v3199_v10  ;;  %v3504_v35 = vld [vmem:[#allocation2 + $0x70] sm:$0xe] }
 0x1fa   :  { %v3171_v14 = vsel %vm5164_vm8, %v3166_v32, %v3170_v57  ;;  %v3222_v4 = vrot.slane %v3221_v16, 4  ;;  %v3259_v57 = vrot.slane %v3257_v40, 4  ;;  %v3238_v32 = vshll.u32 %v5730_v52, 16 }
 0x1fb   :  { %v4094_v43 = vcombine.low %v3157_v25, %v3171_v14  ;;  %v3262_v42 = vrot.slane %v3260_v34, 5  ;;  %v3273_v48 = vrot.slane %v3271_v24, 4  ;;  %v3208_v49 = vrot.slane %v3207_v63, 4 }
 0x1fc   :  { %4539 = vmatpush3.bf16.msra.mxu1 %v4868_v54  ;;  %v3248_v54 = vrot.slane %v3246_v44, 5  ;;  %v3226_v44 = vrot.slane %v3224_v0, 5  ;;  %v3236_v8 = vrot.slane %v3235_v30, 4  ;;  %v4116_v10 = vrot.slane %v3503_v58, 9 }
 0x1fd   :  { %4588 = vmatprep.subr.bf16.mxu1 %v5543_v61  ;;  %v3263_v41 = vor.u32 %v3262_v42, %v3259_v57  ;;  %v3213_v13 = vsel %vm5164_vm8, %v3208_v49, %v3212_v60  ;;  %v3268_v16 = vrot.slane %v3266_v11, 5  ;;  %v4115_v38 = vrot.slane %v3502_v51, 9  ;;  %v3509_v42 = vld [vmem:[#allocation2 + $0x98] sm:$0xe] }
 0x1fe   :  { %v3249_v19 = vor.u32 %v3248_v54, %v3245_v20  ;;  %v3227_v37 = vsel %vm5164_vm8, %v3222_v4, %v3226_v44  ;;  %v4119_v4 = vrot.slane %v3506_v56, 9  ;;  %v3592_v30 = vrot.slane %v5730_v52, 5 }
 0x1ff   :  { %4541 = vmatmul.mubr.bf16.vlgmr.msra.gmra.mrb[0].mxu1 %v4092_v6  ;;  %v3274_v6 = vshll.u32 %v3058_v27, 16  ;;  %v4096_v20 = vcombine.low %v3213_v13, %v3227_v37  ;;  %v3264_v14 = vrot.slane %v3263_v41, 4  ;;  %v3577_v39 = vsel %vm5504_vm11, %v4115_v38, %v3576_v15 }
 0x200   :  { %4596 = vmatpush3.bf16.msra.mxu1 %v5543_v61  ;;  %4544 = vmatprep.mubr.bf16.mxu1 %v4093_v22  ;;  %v5723_v61 = vld [vmem:[#allocation2 + $0x8c] sm:$0x1]  ;;  %v3250_v33 = vrot.slane %v3249_v19, 4  ;;  %v3280_v22 = vshll.u32 %v5739_v53, 16  ;;  %v3588_v19 = vrot.slane %v5721_v2, 5  ;;  %v3600_v52 = vrot.slane %v5736_v45, 5 }
 0x201   :  { %4589 = vmatprep.subr.bf16.mxu1 %v5564_v21  ;;  %v3252_v28 = vshll.u32 %v5723_v61, 16  ;;  %v3269_v40 = vsel %vm5164_vm8, %v3264_v14, %v3268_v16  ;;  %v3596_v0 = vrot.slane %v5723_v61, 5  ;;  %v3593_v61 = vsel %vm5504_vm11, %v4119_v4, %v3592_v30 }
 0x202   :  { %v3282_v5 = vrot.slane %v3280_v22, 5 }
 0x203   :  { %v3254_v55 = vrot.slane %v3252_v28, 5  ;;  %v3508_v28 = vld [vmem:[#allocation2 + $0x90] sm:$0xe] }
 0x204   :  { %4597 = vmatpush3.bf16.msra.mxu1 %v5564_v21  ;;  %v3276_v21 = vrot.slane %v3274_v6, 5  ;;  %v3505_v6 = vld [vmem:[#allocation2 + $0x78] sm:$0xe] }
 0x205   :  { %4590 = vmatprep.subr.bf16.mxu1 %v5580_v7  ;;  %v3255_v25 = vsel %vm5164_vm8, %v3250_v33, %v3254_v55  ;;  %v4118_v47 = vrot.slane %v3505_v6, 9  ;;  %v3604_v33 = vrot.slane %v5739_v53, 5  ;;  %v5812_v6 = vld [vmem:[%s5890_s5] ss:$0 sm:$0xff] }
 0x206   :  { %v3277_v62 = vor.u32 %v3276_v21, %v3273_v48  ;;  %v4121_v48 = vrot.slane %v3508_v28, 9 }
 0x207   :  { %4545 = vmatmul.mubr.bf16.gmra.mrb[4].mxu1 %v4094_v43  ;;  %v3589_v2 = vsel %vm5504_vm11, %v4118_v47, %v3588_v19 }
 0x208   :  { %4598 = vmatpush3.bf16.msra.mxu1 %v5580_v7  ;;  %4548 = vmatprep.mubr.bf16.mxu1 %v4095_v26  ;;  %v3240_v7 = vrot.slane %v3238_v32, 5  ;;  %v3278_v59 = vrot.slane %v3277_v62, 4  ;;  %v3584_v26 = vrot.slane %v5716_v9, 5  ;;  %v4122_v32 = vrot.slane %v3509_v42, 9 }
 0x209   :  { %4591 = vmatprep.subr.bf16.mxu1 %v5591_v29  ;;  %v3601_v49 = vsel %vm5504_vm11, %v4121_v48, %v3600_v52 }
 0x20a   :  { %v3241_v54 = vsel %vm5164_vm8, %v3236_v8, %v3240_v7  ;;  %v3283_v34 = vsel %vm5164_vm8, %v3278_v59, %v3282_v5 }
 0x20b   :  { %v4097_v27 = vcombine.low %v3241_v54, %v3255_v25 }
 0x20c   :  { %4599 = vmatpush3.bf16.msra.mxu1 %v5591_v29  ;;  %v3580_v29 = vrot.slane %v5702_v17, 5  ;;  %v4098_v17 = vcombine.low %v3269_v40, %v3283_v34  ;;  %v5807_v40 = vld [vmem:[%s5889_s4] ss:$0 sm:$0xff]  ;;  %s4981_s4 = smov [#allocation9]  }
 0x20d   :  { %4592 = vmatprep.subr.bf16.mxu1 %v5611_v23  ;;  %s3892_s5 = sshll.u32 %s4981_s4, 4  ;;  %s3893_s5 = int_to_ptr.vmem [resolvable:$true] %s3892_s5 }
 0x20e   :  { %v3581_v24 = vsel %vm5504_vm11, %v4116_v10, %v3580_v29  ;;  %s4945_s17 = scalar_lea.vmem %s3893_s5, 2048  ;;  %p4950_p11 = scmp.lt.s32.totalorder %s3893_s5, %s3893_s5 }
 0x20f   :  { %4549 = vmatmul.mubr.bf16.gmra.mrb[8].mxu1 %v4096_v20  ;;  %v4127_v43 = vcombine.low %v3577_v39, %v3581_v24  ;;  %p4946_p10 = scmp.ne.s32.totalorder %s3893_s5, %s4945_s17  ;;  %p4951_p12 = scmp.lt.s32.totalorder %s4945_s17, %s4945_s17 }
 0x210   :  { %4600 = vmatpush3.bf16.msra.mxu1 %v5611_v23  ;;  %4552 = vmatprep.mubr.bf16.mxu1 %v4097_v27  ;;  %v3507_v23 = vld [vmem:[#allocation2 + $0x88] sm:$0xe] }
 0x211   :  { %4593 = vmatprep.subr.bf16.mxu1 %v5622_v31  ;;  %v4120_v63 = vrot.slane %v3507_v23, 9  ;;  %p4952_p13 = por %p4951_p12, %p4950_p11 }
 0x213   :  { %v3597_v57 = vsel %vm5504_vm11, %v4120_v63, %v3596_v0  ;;  %v385_v63 = vadd.f32 %v5812_v6, %v5116_v46  ;;  %p4953_p0 = pnand %p4952_p13, %p4946_p10 }
 0x214   :  { %4601 = vmatpush3.bf16.msra.mxu1 %v5622_v31  ;;  %v4117_v31 = vrot.slane %v3504_v35, 9  ;;  %v4129_v21 = vcombine.low %v3593_v61, %v3597_v57 }
 0x215   :  { %4594 = vmatprep.subr.bf16.mxu1 %v5641_v3 }
 0x217   :  { %4553 = vmatmul.mubr.bf16.gmra.mrb[12].mxu1 %v4098_v17 }
 0x218   :  { %4602 = vmatpush3.bf16.msra.mxu1 %v5641_v3  ;;  %4580 = vmatprep.mubr.bf16.mxu1 %v4127_v43  ;;  %v3585_v3 = vsel %vm5504_vm11, %v4117_v31, %v3584_v26  ;;  %v387_v43 = vadd.f32 %v5812_v6, %v5130_v1  ;;  %v388_v31 = vadd.f32 %v5812_v6, %v5136_v12 }
 0x219   :  { %4595 = vmatprep.subr.bf16.mxu1 %v5652_v18  ;;  %v4128_v9 = vcombine.low %v3585_v3, %v3589_v2  ;;  %v386_v2 = vadd.f32 %v5812_v6, %v5119_v50 }
 0x21c   :  { %4603 = vmatpush3.bf16.msra.mxu1 %v5652_v18  ;;  %v3605_v18 = vsel %vm5504_vm11, %v4122_v32, %v3604_v33 }
 0x21d   :  { %v4130_v44 = vcombine.low %v3601_v49, %v3605_v18 }
 0x21f   :  { %4581 = vmatmul.mubr.bf16.vlgmr.msra.gmra.mrb[8].mxu1 %v4128_v9 }
 0x220   :  { %4584 = vmatprep.mubr.bf16.mxu1 %v4129_v21 }
 0x227   :  { %4585 = vmatmul.mubr.bf16.gmra.mrb[12].mxu1 %v4130_v44 }
 0x28f   :  { %v4382_v60 = vpop.f32.mrb[32].mxu0 }
 0x290   :  { %v1676_v8 = vpop.f32.mrb[33].mxu0 }
 0x291   :  { %v4383_v55 = vpop.f32.mrb[34].mxu0 }
 0x292   :  { %v1679_v37 = vpop.f32.mrb[35].mxu0 }
 0x297   :  { %v4386_v41 = vpop.f32.mrb[36].mxu0 }
 0x298   :  { %v1692_v62 = vpop.f32.mrb[37].mxu0 }
 0x299   :  { %v4387_v45 = vpop.f32.mrb[38].mxu0 }
 0x29a   :  { %v1695_v22 = vpop.f32.mrb[39].mxu0 }
 0x29f   :  { %v5788_v7 = vpop.f32.mrb[40].mxu0 }
 0x2a0   :  { %v5790_v53 = vpop.f32.mrb[41].mxu0 }
 0x2a1   :  { %v5792_v25 = vpop.f32.mrb[42].mxu0 }
 0x2a2   :  { %v5794_v13 = vpop.f32.mrb[43].mxu0 }
 0x2a7   :  { %v5796_v36 = vpop.f32.mrb[44].mxu0 }
 0x2a8   :  { %v5798_v11 = vpop.f32.mrb[45].mxu0 }
 0x2a9   :  { %v5800_v58 = vpop.f32.mrb[46].mxu0 }
 0x2aa   :  { %v5802_v20 = vpop.f32.mrb[47].mxu0 }
 0x2b0   :  { %v4574_v54 = vpop.f32.mrb[48].mxu0 }
 0x2b1   :  { %v3737_v27 = vpop.f32.mrb[49].mxu0 }
 0x2b2   :  { %v4575_v14 = vpop.f32.mrb[50].mxu0 }
 0x2b3   :  { %v3740_v59 = vpop.f32.mrb[51].mxu0 }
 0x2b8   :  { %v4578_v5 = vpop.f32.mrb[52].mxu0 }
 0x2b9   :  { %v3753_v51 = vpop.f32.mrb[53].mxu0 }
 0x2ba   :  { %v4579_v10 = vpop.f32.mrb[54].mxu0 }
 0x2bb   :  { %v3756_v29 = vpop.f32.mrb[55].mxu0 }
 0x2d2   :  { %v4542_v16 = vpop.f32.mrb[0].mxu1 }
 0x2d3   :  { %v4604_v38 = vadd.f32 %v4542_v16, %v4382_v60  ;;  %v3415_v15 = vpop.f32.mrb[1].mxu1  ;;  %v5917_v60 = vld [vmem:[#allocation15_spill] sm:$0xff] }
 0x2d4   :  { %v4606_v34 = vadd.f32 %v3415_v15, %v1676_v8  ;;  %v4543_v24 = vpop.f32.mrb[2].mxu1  ;;  %v391_v8 = vadd.f32 %v5812_v6, %v5917_v60 }
 0x2d5   :  { %v4605_v23 = vadd.f32 %v4604_v38, %v4574_v54  ;;  %v4608_v17 = vadd.f32 %v4543_v24, %v4383_v55  ;;  %v3418_v39 = vpop.f32.mrb[3].mxu1 }
 0x2d6   :  { %v4607_v35 = vadd.f32 %v4606_v34, %v3737_v27  ;;  %v4610_v19 = vadd.f32 %v3418_v39, %v1679_v37 }
 0x2d7   :  { %v3825_v47 = vadd.f32 %v4605_v23, %v5807_v40  ;;  %v4609_v56 = vadd.f32 %v4608_v17, %v4575_v14 }
 0x2d8   :  { %v3823_v0 = vadd.f32 %v4607_v35, %v5807_v40  ;;  %v4611_v26 = vadd.f32 %v4610_v19, %v3740_v59 }
 0x2d9   :  { %v3841_v4 = vadd.f32 %v3825_v47, %v387_v43  ;;  %v3826_v30 = vadd.f32 %v4609_v56, %v5807_v40  ;;  %v5921_v47 = vld [vmem:[#allocation19_spill] sm:$0xff] }
 0x2da   :  { %v3839_v28 = vadd.f32 %v3823_v0, %v385_v63  ;;  %v3824_v1 = vadd.f32 %v4611_v26, %v5807_v40  ;;  %v4546_v57 = vpop.f32.mrb[4].mxu1  ;;  %v395_v56 = vadd.f32 %v5812_v6, %v5921_v47 }
 0x2db   :  { %v3857_v42 = vmax.f32 %v3841_v4, 0.0  ;;  %v3842_v3 = vadd.f32 %v3826_v30, %v388_v31  ;;  %v4612_v9 = vadd.f32 %v4546_v57, %v4386_v41  ;;  %v3431_v46 = vpop.f32.mrb[5].mxu1  ;;  %v5918_v41 = vld [vmem:[#allocation13_spill] sm:$0xff]  ;;  %v5924_v57 = vld [vmem:[#allocation18_spill] sm:$0xff] }
 0x2dc   :  { %v3855_v61 = vmax.f32 %v3839_v28, 0.0  ;;  %v3840_v48 = vadd.f32 %v3824_v1, %v386_v2  ;;  %v4614_v21 = vadd.f32 %v3431_v46, %v1692_v62  ;;  %v4547_v52 = vpop.f32.mrb[6].mxu1  ;;  %v389_v62 = vadd.f32 %v5812_v6, %v5918_v41  ;;  %v5922_v31 = vld [vmem:[#allocation17_spill] sm:$0xff] }
 0x2dd   :  { %3873 = vst [vmem:[#allocation9 + $0x10] sm:$0xff] %v3857_v42  ;;  %v3858_v12 = vmax.f32 %v3842_v3, 0.0  ;;  %v4613_v32 = vadd.f32 %v4612_v9, %v4578_v5  ;;  %v4616_v33 = vadd.f32 %v4547_v52, %v4387_v45  ;;  %v3434_v49 = vpop.f32.mrb[7].mxu1  ;;  %v5919_v45 = vld [vmem:[#allocation16_spill] sm:$0xff]  ;;  %v5920_v5 = vld [vmem:[#allocation14_spill] sm:$0xff]  ;;  %v393_v4 = vadd.f32 %v5812_v6, %v5922_v31 }
 0x2de   :  { %3871 = vst [vmem:[#allocation9] sm:$0xff] %v3855_v61  ;;  %v3856_v18 = vmax.f32 %v3840_v48, 0.0  ;;  %v4615_v50 = vadd.f32 %v4614_v21, %v3753_v51  ;;  %v4618_v44 = vadd.f32 %v3434_v49, %v1695_v22  ;;  %v392_v14 = vadd.f32 %v5812_v6, %v5919_v45  ;;  %v5928_v45 = vld [vmem:[#allocation22_spill] sm:$0xff] }
 0x2df   :  { %3874 = vst [vmem:[#allocation9 + $0x18] sm:$0xff] %v3858_v12  ;;  %v3829_v55 = vadd.f32 %v4613_v32, %v5807_v40  ;;  %v4617_v37 = vadd.f32 %v4616_v33, %v4579_v10  ;;  %v390_v51 = vadd.f32 %v5812_v6, %v5920_v5  ;;  %v394_v42 = vadd.f32 %v5812_v6, %v5924_v57 }
 0x2e0   :  { %3872 = vst [vmem:[#allocation9 + $0x8] sm:$0xff] %v3856_v18  ;;  %v3827_v54 = vadd.f32 %v4615_v50, %v5807_v40  ;;  %v4619_v27 = vadd.f32 %v4618_v44, %v3756_v29  ;;  %v5925_v18 = vld [vmem:[#allocation23_spill] sm:$0xff] }
 0x2e1   :  { %v3845_v59 = vadd.f32 %v3829_v55, %v391_v8  ;;  %v3830_v22 = vadd.f32 %v4617_v37, %v5807_v40  ;;  %v399_v50 = vadd.f32 %v5812_v6, %v5925_v18  ;;  %v5926_v55 = vld [vmem:[#allocation21_spill] sm:$0xff] }
 0x2e2   :  { %v3843_v16 = vadd.f32 %v3827_v54, %v389_v62  ;;  %v3828_v38 = vadd.f32 %v4619_v27, %v5807_v40  ;;  %v397_v37 = vadd.f32 %v5812_v6, %v5926_v55  ;;  %v5927_v62 = vld [vmem:[#allocation24_spill] sm:$0xff] }
 0x2e3   :  { %v3861_v10 = vmax.f32 %v3845_v59, 0.0  ;;  %v3846_v15 = vadd.f32 %v3830_v22, %v392_v14  ;;  %v398_v14 = vadd.f32 %v5812_v6, %v5928_v45 }
 0x2e4   :  { %v3859_v34 = vmax.f32 %v3843_v16, 0.0  ;;  %v3844_v24 = vadd.f32 %v3828_v38, %v390_v51 }
 0x2e5   :  { %3877 = vst [vmem:[#allocation9 + $0x30] sm:$0xff] %v3861_v10  ;;  %v3862_v23 = vmax.f32 %v3846_v15, 0.0 }
 0x2e6   :  { %3875 = vst [vmem:[#allocation9 + $0x20] sm:$0xff] %v3859_v34  ;;  %v3860_v29 = vmax.f32 %v3844_v24, 0.0 }
 0x2e7   :  { %3878 = vst [vmem:[#allocation9 + $0x38] sm:$0xff] %v3862_v23 }
 0x2e8   :  { %3876 = vst [vmem:[#allocation9 + $0x28] sm:$0xff] %v3860_v29 }
 0x2f2   :  { %v4582_v17 = vpop.f32.mrb[8].mxu1 }
 0x2f3   :  { %v4620_v39 = vadd.f32 %v4582_v17, %v5788_v7  ;;  %v3769_v35 = vpop.f32.mrb[9].mxu1  ;;  %v5923_v7 = vld [vmem:[#allocation20_spill] sm:$0xff] }
 0x2f4   :  { %v4621_v19 = vadd.f32 %v3769_v35, %v5790_v53  ;;  %v4583_v43 = vpop.f32.mrb[10].mxu1  ;;  %v396_v28 = vadd.f32 %v5812_v6, %v5923_v7 }
 0x2f5   :  { %v3833_v63 = vadd.f32 %v4620_v39, %v5807_v40  ;;  %v4622_v0 = vadd.f32 %v4583_v43, %v5792_v25  ;;  %v3772_v26 = vpop.f32.mrb[11].mxu1 }
 0x2f6   :  { %v3831_v30 = vadd.f32 %v4621_v19, %v5807_v40  ;;  %v4623_v2 = vadd.f32 %v3772_v26, %v5794_v13 }
 0x2f7   :  { %v3849_v53 = vadd.f32 %v3833_v63, %v395_v56  ;;  %v3834_v1 = vadd.f32 %v4622_v0, %v5807_v40 }
 0x2f8   :  { %v3847_v3 = vadd.f32 %v3831_v30, %v393_v4  ;;  %v3832_v25 = vadd.f32 %v4623_v2, %v5807_v40 }
 0x2f9   :  { %v3865_v9 = vmax.f32 %v3849_v53, 0.0  ;;  %v3850_v46 = vadd.f32 %v3834_v1, %v396_v28 }
 0x2fa   :  { %v3863_v61 = vmax.f32 %v3847_v3, 0.0  ;;  %v3848_v48 = vadd.f32 %v3832_v25, %v394_v42  ;;  %v4586_v21 = vpop.f32.mrb[12].mxu1 }
 0x2fb   :  { %3881 = vst [vmem:[#allocation9 + $0x50] sm:$0xff] %v3865_v9  ;;  %v3866_v52 = vmax.f32 %v3850_v46, 0.0  ;;  %v4624_v13 = vadd.f32 %v4586_v21, %v5796_v36  ;;  %v3785_v12 = vpop.f32.mrb[13].mxu1 }
 0x2fc   :  { %3879 = vst [vmem:[#allocation9 + $0x40] sm:$0xff] %v3863_v61  ;;  %v3864_v32 = vmax.f32 %v3848_v48, 0.0  ;;  %v4625_v33 = vadd.f32 %v3785_v12, %v5798_v11  ;;  %v4587_v49 = vpop.f32.mrb[14].mxu1  ;;  %v400_v11 = vadd.f32 %v5812_v6, %v5927_v62 }
 0x2fd   :  { %3882 = vst [vmem:[#allocation9 + $0x58] sm:$0xff] %v3866_v52  ;;  %v3837_v44 = vadd.f32 %v4624_v13, %v5807_v40  ;;  %v4626_v60 = vadd.f32 %v4587_v49, %v5800_v58  ;;  %v3788_v8 = vpop.f32.mrb[15].mxu1 }
 0x2fe   :  { %3880 = vst [vmem:[#allocation9 + $0x48] sm:$0xff] %v3864_v32  ;;  %v3835_v36 = vadd.f32 %v4625_v33, %v5807_v40  ;;  %v4627_v41 = vadd.f32 %v3788_v8, %v5802_v20 }
 0x2ff   :  { %v3853_v54 = vadd.f32 %v3837_v44, %v399_v50  ;;  %v3838_v27 = vadd.f32 %v4626_v60, %v5807_v40 }
 0x300   :  { %v3851_v59 = vadd.f32 %v3835_v36, %v397_v37  ;;  %v3836_v58 = vadd.f32 %v4627_v41, %v5807_v40 }
 0x301   :  { %v3869_v22 = vmax.f32 %v3853_v54, 0.0  ;;  %v3854_v5 = vadd.f32 %v3838_v27, %v400_v11 }
 0x302   :  { %v3867_v51 = vmax.f32 %v3851_v59, 0.0  ;;  %v3852_v16 = vadd.f32 %v3836_v58, %v398_v14 }
 0x303   :  { %3885 = vst [vmem:[#allocation9 + $0x70] sm:$0xff] %v3869_v22  ;;  %v3870_v20 = vmax.f32 %v3854_v5, 0.0 }
 0x304   :  { %3883 = vst [vmem:[#allocation9 + $0x60] sm:$0xff] %v3867_v51  ;;  %v3868_v38 = vmax.f32 %v3852_v16, 0.0 }
 0x305   :  { %3886 = vst [vmem:[#allocation9 + $0x78] sm:$0xff] %v3870_v20 }
 0x306   :  { %3884 = vst [vmem:[#allocation9 + $0x68] sm:$0xff] %v3868_v38 }
 0x307   :  { %4956 = shalt.err (!%p4953_p0)
}
 0x308   :  { %s4957_s20 = scalar_lea.hbm %s5891_s6, 2048 }
 0x309   :  { %p4958_p1 = scmp.ne.s32.totalorder %s5891_s6, %s4957_s20  ;;  %p4961_p2 = scmp.lt.u32.totalorder %s4957_s20, %s5891_s6 }
 0x30b   :  { %p4963_p3 = pnand %p4961_p2, %p4958_p1 }
 0x30d   :  { %4966 = shalt.err (!%p4963_p3)
}
 0x30e   :  { %3898 = dma.vmem_to_hbm [thread:$0]  %s3893_s5, 2048, %s5891_s6, [#allocation5], %s4974_s7, %s4974_s7, %s4975_s8  }
 0x30f   :  { %4971 = dma.done.wait [#allocation5], 2048  }
 0x310   :  { %4972 = vsyncadd [#allocation5], 4294965248 }
 0x311   :  { %3902 = vsyncpa [#allocation4], 1 }
 0x312   :  { %3903 = vsyncpa [#allocation7], 1 }
 0x313   :  { %3904 = vsyncpa [#allocation5], 1 }

</bundles_post_ra>
